<compile_context>
chip_gen: v7x
topology: tpu7x:2x2x1
jax: 0.10.0
libtpu: 0.0.40
codegen_flags: <defaults>
</compile_context>

<pallas_src>
import functools

import jax
import jax.numpy as jnp
from jax.experimental import pallas as pl
from jax.experimental.pallas import tpu as pltpu


# ----------------------------------------------------------------------------
# Fused Pallas kernel: (conv3x3 + bias + ReLU) x 2 layers, all heads, one chunk
# ----------------------------------------------------------------------------
def _fused_mh_conv_kernel(x1col_ref, w1_ref, b1_ref, m1_ref, w2_ref, b2_ref,
                          o_ref, y1p_ref, *,
                          K, WF, NPIX1, NPIX2, OFF, BT, C1T, NF2):
    # x1col_ref : (1, K*K*CIN, BT*NPIX1)  layer-1 im2col (built in wrapper, bf16)
    # w1_ref    : (C1T, K*K*CIN)          layer-1 weights, all heads (bf16)
    # b1_ref    : (C1T, 1)                f32
    # m1_ref    : (1, BT*NPIX1)           precomputed frame-column validity mask
    # w2_ref    : (K*K, C2T, C1T)         per-tap block-diagonal layer-2 weights
    # b2_ref    : (C2T, 1)                f32
    # o_ref     : (BT, C2T, NPIX2)        output (lane-dense: NPIX2 % 128 == 0)
    # y1p_ref   : (BT, C1T, NF2)          padded layer-2 frame (VMEM scratch, bf16)
    cdt = y1p_ref.dtype

    # Zero only the frame BORDER columns (a few KB).  The interior
    # [OFF, OFF+NPIX1) is fully overwritten below, so no full-frame re-zeroing;
    # doing the borders each step keeps the chunk axis safe under "parallel"
    # (no reliance on scratch state persisting across a parallel grid axis).
    y1p_ref[:, :, :OFF] = jnp.zeros((BT, C1T, OFF), cdt)
    y1p_ref[:, :, OFF + NPIX1:] = jnp.zeros((BT, C1T, NF2 - OFF - NPIX1), cdt)

    # ----- layer 1: ONE MXU matmul for the whole batch chunk ----------------
    y1 = jnp.dot(w1_ref[...], x1col_ref[0],
                 preferred_element_type=jnp.float32)      # (C1T, BT*NPIX1) f32
    # bias + ReLU in f32; the precomputed mask zeroes frame columns >= Wo1 so
    # the wrap-around garbage doubles as layer-2 zero padding.
    y1 = jnp.maximum(y1 + b1_ref[...], 0.0) * m1_ref[...]
    y1 = y1.astype(cdt)

    # Embed each batch element's activation into its zero-bordered frame.
    for b in range(BT):
        y1p_ref[b, :, OFF:OFF + NPIX1] = y1[:, b * NPIX1:(b + 1) * NPIX1]

    # ----- layer 2: 9 accumulated per-tap matmuls (no im2col, no scratch) ---
    for b in range(BT):
        acc = None
        t = 0
        for kh in range(K):
            for kw in range(K):
                s = kh * WF + kw
                part = jnp.dot(w2_ref[t], y1p_ref[b, :, s:s + NPIX2],
                               preferred_element_type=jnp.float32)
                acc = part if acc is None else acc + part
                t += 1
        y2 = jnp.maximum(acc + b2_ref[...], 0.0)          # bias + ReLU, f32
        o_ref[b] = y2.astype(o_ref.dtype)                 # unmasked lane-dense vst


# ----------------------------------------------------------------------------
# Wrapper: single pallas_call for the whole MultiHeadConvolutional forward
# ----------------------------------------------------------------------------
def fused_forward(x_nchw, w1_im, b1, w2_taps, b2, *, heads, c1, c2, cin, K, pad,
                  batch_tile=None, compute_dtype=jnp.bfloat16):
    """x_nchw: (B, Cin, H, W) -> (B, heads, C2, H_out, W_out)."""
    B, CIN, H, W = x_nchw.shape
    assert CIN == cin
    Ho1, Wo1 = H + 2 * pad - K + 1, W + 2 * pad - K + 1     # layer-1 output
    Ho2, Wo2 = Ho1 + 2 * pad - K + 1, Wo1 + 2 * pad - K + 1  # layer-2 output
    Wp1, Wp2 = W + 2 * pad, Wo1 + 2 * pad

    # Frame width: multiple of 8, wide enough for both padded rows; bump (at
    # most 2x) so Ho2*WF is a multiple of 128 -> fully unmasked output stores.
    WF = -(-max(Wp1, Wp2) // 8) * 8
    for cand in range(WF, 2 * WF + 1, 8):
        if (Ho2 * cand) % 128 == 0:
            WF = cand
            break
    assert WF - Wo1 >= 2 * pad      # zeroed tail cols provide L/R padding (frame trick)

    HF1 = Ho1 + K                    # extra rows so tap slices stay in bounds
    NF1 = HF1 * WF
    NPIX1, NPIX2 = Ho1 * WF, Ho2 * WF
    OFF = pad * WF + pad             # layer-2 padding offset inside the frame
    NF2 = max(OFF + NPIX1, (K - 1) * WF + (K - 1) + NPIX2)
    C1T, C2T = heads * c1, heads * c2
    KK = K * K

    # Batch chunking: a whole chunk is processed per grid step, folded into the
    # matmul N dimension.  (On v7x, pass batch_tile=B//2 to keep 2 "parallel"
    # grid steps so both TensorCores are used; VMEM per step here is ~0.5 MB.)
    BT = batch_tile or min(B, 8)
    NC = -(-B // BT)
    B_pad = NC * BT

    # One-time XLA-side prep: pad, flatten, and layer-1 im2col (hoisted out of
    # the kernel).  Columns: b_local*NPIX1 + r*WF + c; rows: (kh*K+kw)*CIN + i.
    xf = jnp.pad(x_nchw, ((0, B_pad - B), (0, 0),
                          (pad, HF1 - H - pad), (pad, WF - W - pad)))
    xf = xf.reshape(B_pad, CIN, NF1)
    taps = [xf[:, :, kh * WF + kw: kh * WF + kw + NPIX1]
            for kh in range(K) for kw in range(K)]            # (B_pad, CIN, NPIX1) each
    x1col = jnp.stack(taps, axis=1)                           # (B_pad, KK, CIN, NPIX1)
    x1col = x1col.reshape(NC, BT, KK * CIN, NPIX1)
    x1col = jnp.transpose(x1col, (0, 2, 1, 3)).reshape(NC, KK * CIN, BT * NPIX1)
    x1col = x1col.astype(compute_dtype)

    # Precomputed column-validity mask (columns >= Wo1 are zeroed so they act
    # as layer-2 zero padding) — replaces per-step iota + mod in the kernel.
    col = (jnp.arange(BT * NPIX1, dtype=jnp.int32) % NPIX1) % WF
    m1 = (col < Wo1).astype(jnp.float32).reshape(1, BT * NPIX1)

    kernel = functools.partial(
        _fused_mh_conv_kernel, K=K, WF=WF, NPIX1=NPIX1, NPIX2=NPIX2,
        OFF=OFF, BT=BT, C1T=C1T, NF2=NF2)

    out = pl.pallas_call(
        kernel,
        out_shape=jax.ShapeDtypeStruct((B_pad, C2T, NPIX2), x_nchw.dtype),
        grid=(NC,),
        in_specs=[
            pl.BlockSpec((1, KK * CIN, BT * NPIX1), lambda i: (i, 0, 0)),
            pl.BlockSpec((C1T, KK * CIN), lambda i: (0, 0)),
            pl.BlockSpec((C1T, 1), lambda i: (0, 0)),
            pl.BlockSpec((1, BT * NPIX1), lambda i: (0, 0)),
            pl.BlockSpec((KK, C2T, C1T), lambda i: (0, 0, 0)),
            pl.BlockSpec((C2T, 1), lambda i: (0, 0)),
        ],
        out_specs=pl.BlockSpec((BT, C2T, NPIX2), lambda i: (i, 0, 0)),
        scratch_shapes=[
            pltpu.VMEM((BT, C1T, NF2), compute_dtype),   # padded layer-2 frame
        ],
        compiler_params=pltpu.CompilerParams(
            dimension_semantics=("parallel",)),
    )(x1col, w1_im.astype(compute_dtype), b1, m1,
      w2_taps.astype(compute_dtype), b2)

    # (B_pad, heads*C2, Ho2*WF) -> (B, heads, C2, Ho2, Wo2): drop pad batch
    # elements and the frame-only columns.
    out = out[:B].reshape(B, heads, c2, Ho2, WF)[..., :Wo2]
    return out


# ----------------------------------------------------------------------------
# Parameter construction (deterministic, mirrors ConvLayer.init_modules)
# ----------------------------------------------------------------------------
def xavier_normal(key, cout, cin, k):
    fan_in = cin * k * k
    fan_out = cout * k * k
    std = (2.0 / (fan_in + fan_out)) ** 0.5
    return std * jax.random.normal(key, (cout, cin, k, k), jnp.float32)


def init_multihead_params(key, in_channels, channels, kernel_sizes, heads):
    """Returns params[head][layer] = (weight OIHW, bias, padding)."""
    params = []
    for _ in range(heads):
        layers = []
        cin = in_channels
        for (cout, k) in zip(channels, kernel_sizes):
            key, wk = jax.random.split(key)
            w = xavier_normal(wk, cout, cin, k)   # torch Conv2d layout (O, I, Kh, Kw)
            b = jnp.zeros((cout,), jnp.float32)   # zero-init bias
            pad = -(-k // 2)                      # ceil(k / 2), as in Convolutional
            layers.append((w, b, pad))
            cin = cout
        params.append(layers)
    return params


def pack_multihead_params(params):
    """One-time packing of per-head torch-layout params into the fused layout."""
    heads = len(params)
    assert all(len(p) == 2 for p in params), "fused kernel implements depth-2 stacks"
    w1_0, _, pad1 = params[0][0]
    w2_0, _, pad2 = params[0][1]
    K = w1_0.shape[-1]
    assert pad1 == pad2 and w2_0.shape[-1] == K
    c1, cin = w1_0.shape[0], w1_0.shape[1]
    c2 = w2_0.shape[0]

    # Layer 1: rows = head*C1 + o, cols = (kh*K + kw)*Cin + i
    w1_stack = jnp.stack([p[0][0] for p in params])            # (heads, c1, cin, K, K)
    w1_im = jnp.transpose(w1_stack, (0, 1, 3, 4, 2)).reshape(heads * c1, K * K * cin)
    b1 = jnp.concatenate([p[0][1] for p in params]).reshape(heads * c1, 1)

    # Layer 2: per-tap, block-diagonal across heads:
    #   w2_taps[kh*K+kw, h*c2+o, h*c1+i] = W2_h[o, i, kh, kw]
    w2_taps = jnp.zeros((K, K, heads, c2, heads, c1), jnp.float32)
    for h in range(heads):
        w2_taps = w2_taps.at[:, :, h, :, h, :].set(
            jnp.transpose(params[h][1][0], (2, 3, 0, 1)))
    w2_taps = w2_taps.reshape(K * K, heads * c2, heads * c1)
    b2 = jnp.concatenate([p[1][1] for p in params]).reshape(heads * c2, 1)

    cfg = dict(heads=heads, c1=c1, c2=c2, cin=cin, K=K, pad=pad1)
    return (w1_im, b1, w2_taps, b2), cfg


# ----------------------------------------------------------------------------
# Pure-JAX reference (correctness check)
# ----------------------------------------------------------------------------
def _reference_forward(x_nchw, params):
    head_outs = []
    for layers in params:
        out = x_nchw
        for (w, b, pad) in layers:
            out = jax.lax.conv_general_dilated(
                out, w, window_strides=(1, 1),
                padding=[(pad, pad), (pad, pad)],
                dimension_numbers=("NCHW", "OIHW", "NCHW"))
            out = jnp.maximum(out + b[None, :, None, None], 0.0)
        head_outs.append(out[:, None])
    return jnp.concatenate(head_outs, axis=1)


if __name__ == "__main__":
    # Config consistent with the module:
    #   pins    = {'dim': (16, 16), 'channels': 4}          -> conv_dim = 2
    #   phidden = {'channels': [8, 8], 'kernel_size': [3, 3], 'heads': 2}
    B, Cin, H, W = 2, 4, 16, 16
    channels = [8, 8]
    kernel_sizes = [3, 3]
    heads = 2

    key = jax.random.PRNGKey(0)
    key, xk = jax.random.split(key)
    x = jax.random.normal(xk, (B, Cin, H, W), jnp.float32)

    params = init_multihead_params(key, Cin, channels, kernel_sizes, heads)
    packed, cfg = pack_multihead_params(params)

    fwd = jax.jit(functools.partial(fused_forward, **cfg))
    out = jax.block_until_ready(fwd(x, *packed))

    ref = jax.block_until_ready(_reference_forward(x, params))
    assert out.shape == ref.shape == (B, heads, channels[-1], H + 4, W + 4), \
        (out.shape, ref.shape)
    max_err = float(jnp.max(jnp.abs(out - ref)))
    # Matmul operands are bf16 (f32 accumulation), so the tolerance is widened
    # accordingly; observed error is ~1e-2 level on O(1) outputs.
    assert jnp.allclose(out, ref, atol=5e-2, rtol=5e-2), f"mismatch, max err {max_err}"

    print("KERNEL_OK")
</pallas_src>

<mosaic_0001>
module attributes {stable_mosaic.version = 11 : i64} {
  func.func @_fused_mh_conv_kernel(%arg0: i32, %arg1: memref<1x36x1152xbf16, #tpu.memory_space<vmem>>, %arg2: memref<16x36xbf16, #tpu.memory_space<vmem>>, %arg3: memref<16x1xf32, #tpu.memory_space<vmem>>, %arg4: memref<1x1152xf32, #tpu.memory_space<vmem>>, %arg5: memref<9x16x16xbf16, #tpu.memory_space<vmem>>, %arg6: memref<16x1xf32, #tpu.memory_space<vmem>>, %arg7: memref<2x16x640xf32, #tpu.memory_space<vmem>>, %arg8: memref<2x16x706xbf16, #tpu.memory_space<vmem>>) attributes {dimension_semantics = [#tpu.dimension_semantics<parallel>], iteration_bounds = array<i64: 1>, scalar_prefetch = 0 : i64, scratch_operands = 1 : i64, tpu.core_type = #tpu.core_type<tc>, window_params = [{transform_indices = @transform_0, window_bounds = array<i64: 1, 36, 1152>}, {pipeline_mode = #tpu.pipeline_mode<synchronous>, transform_indices = @transform_1, window_bounds = array<i64: 16, 36>}, {pipeline_mode = #tpu.pipeline_mode<synchronous>, transform_indices = @transform_2, window_bounds = array<i64: 16, 1>}, {pipeline_mode = #tpu.pipeline_mode<synchronous>, transform_indices = @transform_3, window_bounds = array<i64: 1, 1152>}, {pipeline_mode = #tpu.pipeline_mode<synchronous>, transform_indices = @transform_4, window_bounds = array<i64: 9, 16, 16>}, {pipeline_mode = #tpu.pipeline_mode<synchronous>, transform_indices = @transform_5, window_bounds = array<i64: 16, 1>}, {transform_indices = @transform_6, window_bounds = array<i64: 2, 16, 640>}]} {
    %cst = arith.constant 0.000000e+00 : bf16
    %0 = vector.broadcast %cst : bf16 to vector<2x16x66xbf16>
    %c0 = arith.constant 0 : index
    %c0_0 = arith.constant 0 : index
    %c0_1 = arith.constant 0 : index
    %1 = vector.load %arg8[%c0, %c0_0, %c0_1] : memref<2x16x706xbf16, #tpu.memory_space<vmem>>, vector<2x16x66xbf16>
    tpu.vector_store %arg8[%c0, %c0_0, %c0_1], %0 {strides = array<i32>} : memref<2x16x706xbf16, #tpu.memory_space<vmem>>, vector<2x16x66xbf16>,
    %cst_2 = arith.constant 0.000000e+00 : bf16
    %2 = vector.broadcast %cst_2 : bf16 to vector<2x16x64xbf16>
    %c0_3 = arith.constant 0 : index
    %c0_4 = arith.constant 0 : index
    %c642 = arith.constant 642 : index
    %3 = vector.load %arg8[%c0_3, %c0_4, %c642] : memref<2x16x706xbf16, #tpu.memory_space<vmem>>, vector<2x16x64xbf16>
    tpu.vector_store %arg8[%c0_3, %c0_4, %c642], %2 {strides = array<i32>} : memref<2x16x706xbf16, #tpu.memory_space<vmem>>, vector<2x16x64xbf16>,
    %c0_5 = arith.constant 0 : index
    %c0_6 = arith.constant 0 : index
    %4 = vector.load %arg2[%c0_5, %c0_6] : memref<16x36xbf16, #tpu.memory_space<vmem>>, vector<16x36xbf16>
    %c0_7 = arith.constant 0 : index
    %c0_8 = arith.constant 0 : index
    %c0_9 = arith.constant 0 : index
    %5 = vector.load %arg1[%c0_7, %c0_8, %c0_9] : memref<1x36x1152xbf16, #tpu.memory_space<vmem>>, vector<1x36x1152xbf16>
    %6 = vector.shape_cast %5 : vector<1x36x1152xbf16> to vector<36x1152xbf16>
    %cst_10 = arith.constant dense<0.000000e+00> : vector<16x1152xf32>
    %7 = tpu.matmul %4, %6, %cst_10 {dimension_numbers = #tpu.dot_dimension_numbers<[1], [0], [0], [1], [0, 0, 1, 1], [], []>} : vector<16x36xbf16>, vector<36x1152xbf16>, vector<16x1152xf32> -> vector<16x1152xf32>
    %c0_11 = arith.constant 0 : index
    %c0_12 = arith.constant 0 : index
    %8 = vector.load %arg3[%c0_11, %c0_12] : memref<16x1xf32, #tpu.memory_space<vmem>>, vector<16x1xf32>
    %9 = vector.broadcast %8 : vector<16x1xf32> to vector<16x1152xf32>
    %10 = arith.addf %7, %9 : vector<16x1152xf32>
    %cst_13 = arith.constant 0.000000e+00 : f32
    %11 = vector.broadcast %cst_13 : f32 to vector<16x1152xf32>
    %12 = arith.maximumf %10, %11 : vector<16x1152xf32>
    %c0_14 = arith.constant 0 : index
    %c0_15 = arith.constant 0 : index
    %13 = vector.load %arg4[%c0_14, %c0_15] : memref<1x1152xf32, #tpu.memory_space<vmem>>, vector<1x1152xf32>
    %14 = vector.broadcast %13 : vector<1x1152xf32> to vector<16x1152xf32>
    %15 = arith.mulf %12, %14 : vector<16x1152xf32>
    %16 = arith.truncf %15 : vector<16x1152xf32> to vector<16x1152xbf16>
    %17 = vector.extract_strided_slice %16 {offsets = [0, 0], sizes = [16, 576], strides = [1, 1]} : vector<16x1152xbf16> to vector<16x576xbf16>
    %c0_16 = arith.constant 0 : index
    %c0_17 = arith.constant 0 : index
    %c66 = arith.constant 66 : index
    %18 = vector.load %arg8[%c0_16, %c0_17, %c66] : memref<2x16x706xbf16, #tpu.memory_space<vmem>>, vector<1x16x576xbf16>
    %19 = vector.shape_cast %18 : vector<1x16x576xbf16> to vector<16x576xbf16>
    %20 = vector.shape_cast %17 : vector<16x576xbf16> to vector<1x16x576xbf16>
    tpu.vector_store %arg8[%c0_16, %c0_17, %c66], %20 {strides = array<i32>} : memref<2x16x706xbf16, #tpu.memory_space<vmem>>, vector<1x16x576xbf16>,
    %21 = vector.extract_strided_slice %16 {offsets = [0, 576], sizes = [16, 576], strides = [1, 1]} : vector<16x1152xbf16> to vector<16x576xbf16>
    %c1 = arith.constant 1 : index
    %c0_18 = arith.constant 0 : index
    %c66_19 = arith.constant 66 : index
    %22 = vector.load %arg8[%c1, %c0_18, %c66_19] : memref<2x16x706xbf16, #tpu.memory_space<vmem>>, vector<1x16x576xbf16>
    %23 = vector.shape_cast %22 : vector<1x16x576xbf16> to vector<16x576xbf16>
    %24 = vector.shape_cast %21 : vector<16x576xbf16> to vector<1x16x576xbf16>
    tpu.vector_store %arg8[%c1, %c0_18, %c66_19], %24 {strides = array<i32>} : memref<2x16x706xbf16, #tpu.memory_space<vmem>>, vector<1x16x576xbf16>,
    %c0_20 = arith.constant 0 : index
    %c0_21 = arith.constant 0 : index
    %c0_22 = arith.constant 0 : index
    %25 = vector.load %arg5[%c0_20, %c0_21, %c0_22] : memref<9x16x16xbf16, #tpu.memory_space<vmem>>, vector<1x16x16xbf16>
    %26 = vector.shape_cast %25 : vector<1x16x16xbf16> to vector<16x16xbf16>
    %c0_23 = arith.constant 0 : index
    %c0_24 = arith.constant 0 : index
    %c0_25 = arith.constant 0 : index
    %27 = vector.load %arg8[%c0_23, %c0_24, %c0_25] : memref<2x16x706xbf16, #tpu.memory_space<vmem>>, vector<1x16x640xbf16>
    %28 = vector.shape_cast %27 : vector<1x16x640xbf16> to vector<16x640xbf16>
    %cst_26 = arith.constant dense<0.000000e+00> : vector<16x640xf32>
    %29 = tpu.matmul %26, %28, %cst_26 {dimension_numbers = #tpu.dot_dimension_numbers<[1], [0], [0], [1], [0, 0, 1, 1], [], []>} : vector<16x16xbf16>, vector<16x640xbf16>, vector<16x640xf32> -> vector<16x640xf32>
    %c1_27 = arith.constant 1 : index
    %c0_28 = arith.constant 0 : index
    %c0_29 = arith.constant 0 : index
    %30 = vector.load %arg5[%c1_27, %c0_28, %c0_29] : memref<9x16x16xbf16, #tpu.memory_space<vmem>>, vector<1x16x16xbf16>
    %31 = vector.shape_cast %30 : vector<1x16x16xbf16> to vector<16x16xbf16>
    %c0_30 = arith.constant 0 : index
    %c0_31 = arith.constant 0 : index
    %c1_32 = arith.constant 1 : index
    %32 = vector.load %arg8[%c0_30, %c0_31, %c1_32] : memref<2x16x706xbf16, #tpu.memory_space<vmem>>, vector<1x16x640xbf16>
    %33 = vector.shape_cast %32 : vector<1x16x640xbf16> to vector<16x640xbf16>
    %cst_33 = arith.constant dense<0.000000e+00> : vector<16x640xf32>
    %34 = tpu.matmul %31, %33, %cst_33 {dimension_numbers = #tpu.dot_dimension_numbers<[1], [0], [0], [1], [0, 0, 1, 1], [], []>} : vector<16x16xbf16>, vector<16x640xbf16>, vector<16x640xf32> -> vector<16x640xf32>
    %35 = arith.addf %29, %34 : vector<16x640xf32>
    %c2 = arith.constant 2 : index
    %c0_34 = arith.constant 0 : index
    %c0_35 = arith.constant 0 : index
    %36 = vector.load %arg5[%c2, %c0_34, %c0_35] : memref<9x16x16xbf16, #tpu.memory_space<vmem>>, vector<1x16x16xbf16>
    %37 = vector.shape_cast %36 : vector<1x16x16xbf16> to vector<16x16xbf16>
    %c0_36 = arith.constant 0 : index
    %c0_37 = arith.constant 0 : index
    %c2_38 = arith.constant 2 : index
    %38 = vector.load %arg8[%c0_36, %c0_37, %c2_38] : memref<2x16x706xbf16, #tpu.memory_space<vmem>>, vector<1x16x640xbf16>
    %39 = vector.shape_cast %38 : vector<1x16x640xbf16> to vector<16x640xbf16>
    %cst_39 = arith.constant dense<0.000000e+00> : vector<16x640xf32>
    %40 = tpu.matmul %37, %39, %cst_39 {dimension_numbers = #tpu.dot_dimension_numbers<[1], [0], [0], [1], [0, 0, 1, 1], [], []>} : vector<16x16xbf16>, vector<16x640xbf16>, vector<16x640xf32> -> vector<16x640xf32>
    %41 = arith.addf %35, %40 : vector<16x640xf32>
    %c3 = arith.constant 3 : index
    %c0_40 = arith.constant 0 : index
    %c0_41 = arith.constant 0 : index
    %42 = vector.load %arg5[%c3, %c0_40, %c0_41] : memref<9x16x16xbf16, #tpu.memory_space<vmem>>, vector<1x16x16xbf16>
    %43 = vector.shape_cast %42 : vector<1x16x16xbf16> to vector<16x16xbf16>
    %c0_42 = arith.constant 0 : index
    %c0_43 = arith.constant 0 : index
    %c32 = arith.constant 32 : index
    %44 = vector.load %arg8[%c0_42, %c0_43, %c32] : memref<2x16x706xbf16, #tpu.memory_space<vmem>>, vector<1x16x640xbf16>
    %45 = vector.shape_cast %44 : vector<1x16x640xbf16> to vector<16x640xbf16>
    %cst_44 = arith.constant dense<0.000000e+00> : vector<16x640xf32>
    %46 = tpu.matmul %43, %45, %cst_44 {dimension_numbers = #tpu.dot_dimension_numbers<[1], [0], [0], [1], [0, 0, 1, 1], [], []>} : vector<16x16xbf16>, vector<16x640xbf16>, vector<16x640xf32> -> vector<16x640xf32>
    %47 = arith.addf %41, %46 : vector<16x640xf32>
    %c4 = arith.constant 4 : index
    %c0_45 = arith.constant 0 : index
    %c0_46 = arith.constant 0 : index
    %48 = vector.load %arg5[%c4, %c0_45, %c0_46] : memref<9x16x16xbf16, #tpu.memory_space<vmem>>, vector<1x16x16xbf16>
    %49 = vector.shape_cast %48 : vector<1x16x16xbf16> to vector<16x16xbf16>
    %c0_47 = arith.constant 0 : index
    %c0_48 = arith.constant 0 : index
    %c33 = arith.constant 33 : index
    %50 = vector.load %arg8[%c0_47, %c0_48, %c33] : memref<2x16x706xbf16, #tpu.memory_space<vmem>>, vector<1x16x640xbf16>
    %51 = vector.shape_cast %50 : vector<1x16x640xbf16> to vector<16x640xbf16>
    %cst_49 = arith.constant dense<0.000000e+00> : vector<16x640xf32>
    %52 = tpu.matmul %49, %51, %cst_49 {dimension_numbers = #tpu.dot_dimension_numbers<[1], [0], [0], [1], [0, 0, 1, 1], [], []>} : vector<16x16xbf16>, vector<16x640xbf16>, vector<16x640xf32> -> vector<16x640xf32>
    %53 = arith.addf %47, %52 : vector<16x640xf32>
    %c5 = arith.constant 5 : index
    %c0_50 = arith.constant 0 : index
    %c0_51 = arith.constant 0 : index
    %54 = vector.load %arg5[%c5, %c0_50, %c0_51] : memref<9x16x16xbf16, #tpu.memory_space<vmem>>, vector<1x16x16xbf16>
    %55 = vector.shape_cast %54 : vector<1x16x16xbf16> to vector<16x16xbf16>
    %c0_52 = arith.constant 0 : index
    %c0_53 = arith.constant 0 : index
    %c34 = arith.constant 34 : index
    %56 = vector.load %arg8[%c0_52, %c0_53, %c34] : memref<2x16x706xbf16, #tpu.memory_space<vmem>>, vector<1x16x640xbf16>
    %57 = vector.shape_cast %56 : vector<1x16x640xbf16> to vector<16x640xbf16>
    %cst_54 = arith.constant dense<0.000000e+00> : vector<16x640xf32>
    %58 = tpu.matmul %55, %57, %cst_54 {dimension_numbers = #tpu.dot_dimension_numbers<[1], [0], [0], [1], [0, 0, 1, 1], [], []>} : vector<16x16xbf16>, vector<16x640xbf16>, vector<16x640xf32> -> vector<16x640xf32>
    %59 = arith.addf %53, %58 : vector<16x640xf32>
    %c6 = arith.constant 6 : index
    %c0_55 = arith.constant 0 : index
    %c0_56 = arith.constant 0 : index
    %60 = vector.load %arg5[%c6, %c0_55, %c0_56] : memref<9x16x16xbf16, #tpu.memory_space<vmem>>, vector<1x16x16xbf16>
    %61 = vector.shape_cast %60 : vector<1x16x16xbf16> to vector<16x16xbf16>
    %c0_57 = arith.constant 0 : index
    %c0_58 = arith.constant 0 : index
    %c64 = arith.constant 64 : index
    %62 = vector.load %arg8[%c0_57, %c0_58, %c64] : memref<2x16x706xbf16, #tpu.memory_space<vmem>>, vector<1x16x640xbf16>
    %63 = vector.shape_cast %62 : vector<1x16x640xbf16> to vector<16x640xbf16>
    %cst_59 = arith.constant dense<0.000000e+00> : vector<16x640xf32>
    %64 = tpu.matmul %61, %63, %cst_59 {dimension_numbers = #tpu.dot_dimension_numbers<[1], [0], [0], [1], [0, 0, 1, 1], [], []>} : vector<16x16xbf16>, vector<16x640xbf16>, vector<16x640xf32> -> vector<16x640xf32>
    %65 = arith.addf %59, %64 : vector<16x640xf32>
    %c7 = arith.constant 7 : index
    %c0_60 = arith.constant 0 : index
    %c0_61 = arith.constant 0 : index
    %66 = vector.load %arg5[%c7, %c0_60, %c0_61] : memref<9x16x16xbf16, #tpu.memory_space<vmem>>, vector<1x16x16xbf16>
    %67 = vector.shape_cast %66 : vector<1x16x16xbf16> to vector<16x16xbf16>
    %c0_62 = arith.constant 0 : index
    %c0_63 = arith.constant 0 : index
    %c65 = arith.constant 65 : index
    %68 = vector.load %arg8[%c0_62, %c0_63, %c65] : memref<2x16x706xbf16, #tpu.memory_space<vmem>>, vector<1x16x640xbf16>
    %69 = vector.shape_cast %68 : vector<1x16x640xbf16> to vector<16x640xbf16>
    %cst_64 = arith.constant dense<0.000000e+00> : vector<16x640xf32>
    %70 = tpu.matmul %67, %69, %cst_64 {dimension_numbers = #tpu.dot_dimension_numbers<[1], [0], [0], [1], [0, 0, 1, 1], [], []>} : vector<16x16xbf16>, vector<16x640xbf16>, vector<16x640xf32> -> vector<16x640xf32>
    %71 = arith.addf %65, %70 : vector<16x640xf32>
    %c8 = arith.constant 8 : index
    %c0_65 = arith.constant 0 : index
    %c0_66 = arith.constant 0 : index
    %72 = vector.load %arg5[%c8, %c0_65, %c0_66] : memref<9x16x16xbf16, #tpu.memory_space<vmem>>, vector<1x16x16xbf16>
    %73 = vector.shape_cast %72 : vector<1x16x16xbf16> to vector<16x16xbf16>
    %c0_67 = arith.constant 0 : index
    %c0_68 = arith.constant 0 : index
    %c66_69 = arith.constant 66 : index
    %74 = vector.load %arg8[%c0_67, %c0_68, %c66_69] : memref<2x16x706xbf16, #tpu.memory_space<vmem>>, vector<1x16x640xbf16>
    %75 = vector.shape_cast %74 : vector<1x16x640xbf16> to vector<16x640xbf16>
    %cst_70 = arith.constant dense<0.000000e+00> : vector<16x640xf32>
    %76 = tpu.matmul %73, %75, %cst_70 {dimension_numbers = #tpu.dot_dimension_numbers<[1], [0], [0], [1], [0, 0, 1, 1], [], []>} : vector<16x16xbf16>, vector<16x640xbf16>, vector<16x640xf32> -> vector<16x640xf32>
    %77 = arith.addf %71, %76 : vector<16x640xf32>
    %c0_71 = arith.constant 0 : index
    %c0_72 = arith.constant 0 : index
    %78 = vector.load %arg6[%c0_71, %c0_72] : memref<16x1xf32, #tpu.memory_space<vmem>>, vector<16x1xf32>
    %79 = vector.broadcast %78 : vector<16x1xf32> to vector<16x640xf32>
    %80 = arith.addf %77, %79 : vector<16x640xf32>
    %cst_73 = arith.constant 0.000000e+00 : f32
    %81 = vector.broadcast %cst_73 : f32 to vector<16x640xf32>
    %82 = arith.maximumf %80, %81 : vector<16x640xf32>
    %c0_74 = arith.constant 0 : index
    %c0_75 = arith.constant 0 : index
    %c0_76 = arith.constant 0 : index
    %83 = vector.load %arg7[%c0_74, %c0_75, %c0_76] : memref<2x16x640xf32, #tpu.memory_space<vmem>>, vector<1x16x640xf32>
    %84 = vector.shape_cast %83 : vector<1x16x640xf32> to vector<16x640xf32>
    %85 = vector.shape_cast %82 : vector<16x640xf32> to vector<1x16x640xf32>
    tpu.vector_store %arg7[%c0_74, %c0_75, %c0_76], %85 {strides = array<i32>} : memref<2x16x640xf32, #tpu.memory_space<vmem>>, vector<1x16x640xf32>,
    %c0_77 = arith.constant 0 : index
    %c0_78 = arith.constant 0 : index
    %c0_79 = arith.constant 0 : index
    %86 = vector.load %arg5[%c0_77, %c0_78, %c0_79] : memref<9x16x16xbf16, #tpu.memory_space<vmem>>, vector<1x16x16xbf16>
    %87 = vector.shape_cast %86 : vector<1x16x16xbf16> to vector<16x16xbf16>
    %c1_80 = arith.constant 1 : index
    %c0_81 = arith.constant 0 : index
    %c0_82 = arith.constant 0 : index
    %88 = vector.load %arg8[%c1_80, %c0_81, %c0_82] : memref<2x16x706xbf16, #tpu.memory_space<vmem>>, vector<1x16x640xbf16>
    %89 = vector.shape_cast %88 : vector<1x16x640xbf16> to vector<16x640xbf16>
    %cst_83 = arith.constant dense<0.000000e+00> : vector<16x640xf32>
    %90 = tpu.matmul %87, %89, %cst_83 {dimension_numbers = #tpu.dot_dimension_numbers<[1], [0], [0], [1], [0, 0, 1, 1], [], []>} : vector<16x16xbf16>, vector<16x640xbf16>, vector<16x640xf32> -> vector<16x640xf32>
    %c1_84 = arith.constant 1 : index
    %c0_85 = arith.constant 0 : index
    %c0_86 = arith.constant 0 : index
    %91 = vector.load %arg5[%c1_84, %c0_85, %c0_86] : memref<9x16x16xbf16, #tpu.memory_space<vmem>>, vector<1x16x16xbf16>
    %92 = vector.shape_cast %91 : vector<1x16x16xbf16> to vector<16x16xbf16>
    %c1_87 = arith.constant 1 : index
    %c0_88 = arith.constant 0 : index
    %c1_89 = arith.constant 1 : index
    %93 = vector.load %arg8[%c1_87, %c0_88, %c1_89] : memref<2x16x706xbf16, #tpu.memory_space<vmem>>, vector<1x16x640xbf16>
    %94 = vector.shape_cast %93 : vector<1x16x640xbf16> to vector<16x640xbf16>
    %cst_90 = arith.constant dense<0.000000e+00> : vector<16x640xf32>
    %95 = tpu.matmul %92, %94, %cst_90 {dimension_numbers = #tpu.dot_dimension_numbers<[1], [0], [0], [1], [0, 0, 1, 1], [], []>} : vector<16x16xbf16>, vector<16x640xbf16>, vector<16x640xf32> -> vector<16x640xf32>
    %96 = arith.addf %90, %95 : vector<16x640xf32>
    %c2_91 = arith.constant 2 : index
    %c0_92 = arith.constant 0 : index
    %c0_93 = arith.constant 0 : index
    %97 = vector.load %arg5[%c2_91, %c0_92, %c0_93] : memref<9x16x16xbf16, #tpu.memory_space<vmem>>, vector<1x16x16xbf16>
    %98 = vector.shape_cast %97 : vector<1x16x16xbf16> to vector<16x16xbf16>
    %c1_94 = arith.constant 1 : index
    %c0_95 = arith.constant 0 : index
    %c2_96 = arith.constant 2 : index
    %99 = vector.load %arg8[%c1_94, %c0_95, %c2_96] : memref<2x16x706xbf16, #tpu.memory_space<vmem>>, vector<1x16x640xbf16>
    %100 = vector.shape_cast %99 : vector<1x16x640xbf16> to vector<16x640xbf16>
    %cst_97 = arith.constant dense<0.000000e+00> : vector<16x640xf32>
    %101 = tpu.matmul %98, %100, %cst_97 {dimension_numbers = #tpu.dot_dimension_numbers<[1], [0], [0], [1], [0, 0, 1, 1], [], []>} : vector<16x16xbf16>, vector<16x640xbf16>, vector<16x640xf32> -> vector<16x640xf32>
    %102 = arith.addf %96, %101 : vector<16x640xf32>
    %c3_98 = arith.constant 3 : index
    %c0_99 = arith.constant 0 : index
    %c0_100 = arith.constant 0 : index
    %103 = vector.load %arg5[%c3_98, %c0_99, %c0_100] : memref<9x16x16xbf16, #tpu.memory_space<vmem>>, vector<1x16x16xbf16>
    %104 = vector.shape_cast %103 : vector<1x16x16xbf16> to vector<16x16xbf16>
    %c1_101 = arith.constant 1 : index
    %c0_102 = arith.constant 0 : index
    %c32_103 = arith.constant 32 : index
    %105 = vector.load %arg8[%c1_101, %c0_102, %c32_103] : memref<2x16x706xbf16, #tpu.memory_space<vmem>>, vector<1x16x640xbf16>
    %106 = vector.shape_cast %105 : vector<1x16x640xbf16> to vector<16x640xbf16>
    %cst_104 = arith.constant dense<0.000000e+00> : vector<16x640xf32>
    %107 = tpu.matmul %104, %106, %cst_104 {dimension_numbers = #tpu.dot_dimension_numbers<[1], [0], [0], [1], [0, 0, 1, 1], [], []>} : vector<16x16xbf16>, vector<16x640xbf16>, vector<16x640xf32> -> vector<16x640xf32>
    %108 = arith.addf %102, %107 : vector<16x640xf32>
    %c4_105 = arith.constant 4 : index
    %c0_106 = arith.constant 0 : index
    %c0_107 = arith.constant 0 : index
    %109 = vector.load %arg5[%c4_105, %c0_106, %c0_107] : memref<9x16x16xbf16, #tpu.memory_space<vmem>>, vector<1x16x16xbf16>
    %110 = vector.shape_cast %109 : vector<1x16x16xbf16> to vector<16x16xbf16>
    %c1_108 = arith.constant 1 : index
    %c0_109 = arith.constant 0 : index
    %c33_110 = arith.constant 33 : index
    %111 = vector.load %arg8[%c1_108, %c0_109, %c33_110] : memref<2x16x706xbf16, #tpu.memory_space<vmem>>, vector<1x16x640xbf16>
    %112 = vector.shape_cast %111 : vector<1x16x640xbf16> to vector<16x640xbf16>
    %cst_111 = arith.constant dense<0.000000e+00> : vector<16x640xf32>
    %113 = tpu.matmul %110, %112, %cst_111 {dimension_numbers = #tpu.dot_dimension_numbers<[1], [0], [0], [1], [0, 0, 1, 1], [], []>} : vector<16x16xbf16>, vector<16x640xbf16>, vector<16x640xf32> -> vector<16x640xf32>
    %114 = arith.addf %108, %113 : vector<16x640xf32>
    %c5_112 = arith.constant 5 : index
    %c0_113 = arith.constant 0 : index
    %c0_114 = arith.constant 0 : index
    %115 = vector.load %arg5[%c5_112, %c0_113, %c0_114] : memref<9x16x16xbf16, #tpu.memory_space<vmem>>, vector<1x16x16xbf16>
    %116 = vector.shape_cast %115 : vector<1x16x16xbf16> to vector<16x16xbf16>
    %c1_115 = arith.constant 1 : index
    %c0_116 = arith.constant 0 : index
    %c34_117 = arith.constant 34 : index
    %117 = vector.load %arg8[%c1_115, %c0_116, %c34_117] : memref<2x16x706xbf16, #tpu.memory_space<vmem>>, vector<1x16x640xbf16>
    %118 = vector.shape_cast %117 : vector<1x16x640xbf16> to vector<16x640xbf16>
    %cst_118 = arith.constant dense<0.000000e+00> : vector<16x640xf32>
    %119 = tpu.matmul %116, %118, %cst_118 {dimension_numbers = #tpu.dot_dimension_numbers<[1], [0], [0], [1], [0, 0, 1, 1], [], []>} : vector<16x16xbf16>, vector<16x640xbf16>, vector<16x640xf32> -> vector<16x640xf32>
    %120 = arith.addf %114, %119 : vector<16x640xf32>
    %c6_119 = arith.constant 6 : index
    %c0_120 = arith.constant 0 : index
    %c0_121 = arith.constant 0 : index
    %121 = vector.load %arg5[%c6_119, %c0_120, %c0_121] : memref<9x16x16xbf16, #tpu.memory_space<vmem>>, vector<1x16x16xbf16>
    %122 = vector.shape_cast %121 : vector<1x16x16xbf16> to vector<16x16xbf16>
    %c1_122 = arith.constant 1 : index
    %c0_123 = arith.constant 0 : index
    %c64_124 = arith.constant 64 : index
    %123 = vector.load %arg8[%c1_122, %c0_123, %c64_124] : memref<2x16x706xbf16, #tpu.memory_space<vmem>>, vector<1x16x640xbf16>
    %124 = vector.shape_cast %123 : vector<1x16x640xbf16> to vector<16x640xbf16>
    %cst_125 = arith.constant dense<0.000000e+00> : vector<16x640xf32>
    %125 = tpu.matmul %122, %124, %cst_125 {dimension_numbers = #tpu.dot_dimension_numbers<[1], [0], [0], [1], [0, 0, 1, 1], [], []>} : vector<16x16xbf16>, vector<16x640xbf16>, vector<16x640xf32> -> vector<16x640xf32>
    %126 = arith.addf %120, %125 : vector<16x640xf32>
    %c7_126 = arith.constant 7 : index
    %c0_127 = arith.constant 0 : index
    %c0_128 = arith.constant 0 : index
    %127 = vector.load %arg5[%c7_126, %c0_127, %c0_128] : memref<9x16x16xbf16, #tpu.memory_space<vmem>>, vector<1x16x16xbf16>
    %128 = vector.shape_cast %127 : vector<1x16x16xbf16> to vector<16x16xbf16>
    %c1_129 = arith.constant 1 : index
    %c0_130 = arith.constant 0 : index
    %c65_131 = arith.constant 65 : index
    %129 = vector.load %arg8[%c1_129, %c0_130, %c65_131] : memref<2x16x706xbf16, #tpu.memory_space<vmem>>, vector<1x16x640xbf16>
    %130 = vector.shape_cast %129 : vector<1x16x640xbf16> to vector<16x640xbf16>
    %cst_132 = arith.constant dense<0.000000e+00> : vector<16x640xf32>
    %131 = tpu.matmul %128, %130, %cst_132 {dimension_numbers = #tpu.dot_dimension_numbers<[1], [0], [0], [1], [0, 0, 1, 1], [], []>} : vector<16x16xbf16>, vector<16x640xbf16>, vector<16x640xf32> -> vector<16x640xf32>
    %132 = arith.addf %126, %131 : vector<16x640xf32>
    %c8_133 = arith.constant 8 : index
    %c0_134 = arith.constant 0 : index
    %c0_135 = arith.constant 0 : index
    %133 = vector.load %arg5[%c8_133, %c0_134, %c0_135] : memref<9x16x16xbf16, #tpu.memory_space<vmem>>, vector<1x16x16xbf16>
    %134 = vector.shape_cast %133 : vector<1x16x16xbf16> to vector<16x16xbf16>
    %c1_136 = arith.constant 1 : index
    %c0_137 = arith.constant 0 : index
    %c66_138 = arith.constant 66 : index
    %135 = vector.load %arg8[%c1_136, %c0_137, %c66_138] : memref<2x16x706xbf16, #tpu.memory_space<vmem>>, vector<1x16x640xbf16>
    %136 = vector.shape_cast %135 : vector<1x16x640xbf16> to vector<16x640xbf16>
    %cst_139 = arith.constant dense<0.000000e+00> : vector<16x640xf32>
    %137 = tpu.matmul %134, %136, %cst_139 {dimension_numbers = #tpu.dot_dimension_numbers<[1], [0], [0], [1], [0, 0, 1, 1], [], []>} : vector<16x16xbf16>, vector<16x640xbf16>, vector<16x640xf32> -> vector<16x640xf32>
    %138 = arith.addf %132, %137 : vector<16x640xf32>
    %c0_140 = arith.constant 0 : index
    %c0_141 = arith.constant 0 : index
    %139 = vector.load %arg6[%c0_140, %c0_141] : memref<16x1xf32, #tpu.memory_space<vmem>>, vector<16x1xf32>
    %140 = vector.broadcast %139 : vector<16x1xf32> to vector<16x640xf32>
    %141 = arith.addf %138, %140 : vector<16x640xf32>
    %cst_142 = arith.constant 0.000000e+00 : f32
    %142 = vector.broadcast %cst_142 : f32 to vector<16x640xf32>
    %143 = arith.maximumf %141, %142 : vector<16x640xf32>
    %c1_143 = arith.constant 1 : index
    %c0_144 = arith.constant 0 : index
    %c0_145 = arith.constant 0 : index
    %144 = vector.load %arg7[%c1_143, %c0_144, %c0_145] : memref<2x16x640xf32, #tpu.memory_space<vmem>>, vector<1x16x640xf32>
    %145 = vector.shape_cast %144 : vector<1x16x640xf32> to vector<16x640xf32>
    %146 = vector.shape_cast %143 : vector<16x640xf32> to vector<1x16x640xf32>
    tpu.vector_store %arg7[%c1_143, %c0_144, %c0_145], %146 {strides = array<i32>} : memref<2x16x640xf32, #tpu.memory_space<vmem>>, vector<1x16x640xf32>,
    return
  }
  func.func @transform_0(%arg0: i32) -> (i32, i32, i32) {
    %c0_i32 = arith.constant 0 : i32
    %c0_i32_0 = arith.constant 0 : i32
    %c0_i32_1 = arith.constant 0 : i32
    return %arg0, %c0_i32, %c0_i32_0 : i32, i32, i32
  }
  func.func @transform_1(%arg0: i32) -> (i32, i32) {
    %c0_i32 = arith.constant 0 : i32
    %c0_i32_0 = arith.constant 0 : i32
    %c0_i32_1 = arith.constant 0 : i32
    return %c0_i32, %c0_i32_0 : i32, i32
  }
  func.func @transform_2(%arg0: i32) -> (i32, i32) {
    %c0_i32 = arith.constant 0 : i32
    %c0_i32_0 = arith.constant 0 : i32
    %c0_i32_1 = arith.constant 0 : i32
    return %c0_i32, %c0_i32_0 : i32, i32
  }
  func.func @transform_3(%arg0: i32) -> (i32, i32) {
    %c0_i32 = arith.constant 0 : i32
    %c0_i32_0 = arith.constant 0 : i32
    %c0_i32_1 = arith.constant 0 : i32
    return %c0_i32, %c0_i32_0 : i32, i32
  }
  func.func @transform_4(%arg0: i32) -> (i32, i32, i32) {
    %c0_i32 = arith.constant 0 : i32
    %c0_i32_0 = arith.constant 0 : i32
    %c0_i32_1 = arith.constant 0 : i32
    %c0_i32_2 = arith.constant 0 : i32
    return %c0_i32, %c0_i32_0, %c0_i32_1 : i32, i32, i32
  }
  func.func @transform_5(%arg0: i32) -> (i32, i32) {
    %c0_i32 = arith.constant 0 : i32
    %c0_i32_0 = arith.constant 0 : i32
    %c0_i32_1 = arith.constant 0 : i32
    return %c0_i32, %c0_i32_0 : i32, i32
  }
  func.func @transform_6(%arg0: i32) -> (i32, i32, i32) {
    %c0_i32 = arith.constant 0 : i32
    %c0_i32_0 = arith.constant 0 : i32
    %c0_i32_1 = arith.constant 0 : i32
    return %arg0, %c0_i32, %c0_i32_0 : i32, i32, i32
  }
}

</mosaic_0001>

<bundles_post_ra>
// kernel: fused_forward.1
= control target key start
LH: loop header
LB: loop body
LE: loop exit
PB: predicated region body
PF: predicated region fallthrough
CT: control target
= control target key end

     0   :  { %v4189_v1 = vmov 0   ;;  %v4190_v2 = vmov 0.0   ;;  %vm4191_vm0 = vmmov 0   ;;  %vm193_vm1 = vcmask 1041408   ;;  %s4192_s25 = smov 66   ;;  %s4194_s26 = smov 127   ;;  %s5124_s0 = inlined_call_operand.vmem [shape: bf16[1,36,1152], index: 0, kind: input, shape index: {}]   ;;  %s5125_s1 = inlined_call_operand.vmem [shape: bf16[16,36], index: 1, kind: input, shape index: {}]   ;;  %s5126_s2 = inlined_call_operand.vmem [shape: f32[16,1], index: 2, kind: input, shape index: {}]   ;;  %s5127_s3 = inlined_call_operand.vmem [shape: f32[1,1152], index: 3, kind: input, shape index: {}]   ;;  %s5128_s4 = inlined_call_operand.vmem [shape: bf16[9,16,16], index: 4, kind: input, shape index: {}]   ;;  %s5129_s5 = inlined_call_operand.vmem [shape: f32[16,1], index: 5, kind: input, shape index: {}]   ;;  %s5130_s6 = inlined_call_operand.vmem [shape: f32[2,16,640], index: 6, kind: output, shape index: {}]  }
   0x1   :  { %v4135_v0 = vld [vmem:[%s5124_s0 + $0x4] ss:$36 sps:$4 sm:$0xff]   ;;  %253 = vmatprep.mubr.bf16.mxu1 %v4189_v1  ;;  %3874 = vmatprep.subr.bf16.mxu0 %v4190_v2  ;;  %v4138_v4 = vld [vmem:[%s5124_s0 + $0x4c] ss:$36 sps:$4 sm:$0xff]   ;;  %vm189_vm2 = vcmask 293888   ;;  %v456_v41 = vlaneseq  ;;  %vm24_vm3 = vcmask 539648  }
   0x2   :  { %v4137_v3 = vld [vmem:[%s5124_s0] ss:$36 sps:$4 sm:$0xff]   ;;  %3880 = vmatprep.mubr.msk.bf16.mxu0 %vm4191_vm0, %v4190_v2  ;;  %4133 = vset.pattern.permute.xlu0 %v4189_v1  ;;  %v52_v5 = vld [vmem:[%s5124_s0 + $0x90] sm:$0x33]  ;;  %v4140_v6 = vld [vmem:[%s5124_s0 + $0x48] ss:$36 sps:$4 sm:$0xff]  }
   0x3   :  { %221 = vmatprep.subr.bf16.mxu1 %v4135_v0  ;;  %4134 = vset.pattern.permute.xlu1 %v4189_v1  ;;  %v3701_v7 = vcombine.low %v52_v5, %v52_v5  ;;  %v3702_v8 = vcombine.high %v52_v5, %v52_v5  ;;  %v4150_v10 = vld [vmem:[%s5124_s0 + $0x20] ss:$36 sps:$4 sm:$0xff]   ;;  %v4146_v11 = vld [vmem:[%s5124_s0 + $0xc] ss:$36 sps:$4 sm:$0xff]   ;;  %v4149_v16 = vld [vmem:[%s5124_s0 + $0x54] ss:$36 sps:$4 sm:$0xff]  }
   0x4   :  { %222 = vmatpush1.bf16.msra.mxu1 %v4137_v3  ;;  %3875 = vmatpush3.bf16.msra.mxu0 %v4150_v10  ;;  %v4153_v12 = vld [vmem:[%s5124_s0 + $0x68] ss:$36 sps:$4 sm:$0xff]   ;;  %v4272_v13 = vld [vmem:[%s5125_s1] sm:$0xff]   ;;  %v4157_v15 = vld [vmem:[%s5124_s0 + $0xb0] ss:$0 sps:$4 sm:$0x33]  }
   0x5   :  { %223 = vmatprep.subr.bf16.mxu1 %v4138_v4  ;;  %v195_v9 = vsel %vm193_vm1, %v3701_v7, 0  ;;  %3876 = vmatprep.subr.bf16.mxu0 %v4190_v2  ;;  %v4144_v14 = vld [vmem:[%s5124_s0 + $0x8] ss:$36 sps:$4 sm:$0xff]   ;;  %v53_v17 = vld [vmem:[%s5124_s0 + $0x98] sm:$0x33]  ;;  %v219_v18 = vsel %vm193_vm1, %v4157_v15, 0 }
   0x6   :  { %v4147_v19 = vld [vmem:[%s5124_s0 + $0x50] ss:$36 sps:$4 sm:$0xff]   ;;  %v57_v20 = vld [vmem:[%s5126_s2] sm:$0xff]  ;;  %v3704_v21 = vcombine.high %v53_v17, %v53_v17  ;;  %v3703_v22 = vcombine.low %v53_v17, %v53_v17  ;;  %v58_v23 = vld [vmem:[%s5126_s2 + $0x8] sm:$0xff]  ;;  %v4351_v42 = vshrl.u32 %v456_v41, 7  ;;  %25 = vst.msk [vmem:[#allocation2] sm:$0xff] %vm24_vm3, %v4189_v1 }
   0x7   :  { %61 = vperm.xlu0 %4133, %v57_v20   ;;  %v4156_v25 = vld [vmem:[%s5124_s0 + $0x14] ss:$36 sps:$4 sm:$0xff]   ;;  %v4160_v27 = vld [vmem:[%s5124_s0 + $0x5c] ss:$36 sps:$4 sm:$0xff]   ;;  %v4168_v35 = vld [vmem:[%s5124_s0 + $0x64] ss:$36 sps:$4 sm:$0xff]  }
   0x8   :  { %224 = vmatpush1.bf16.msra.mxu1 %v4140_v6  ;;  %3877 = vmatpush3.bf16.msra.mxu0 %v4153_v12  ;;  %v201_v24 = vsel %vm193_vm1, %v3703_v22, 0  ;;  %v4154_v26 = vld [vmem:[%s5124_s0 + $0x10] ss:$36 sps:$4 sm:$0xff]   ;;  %v54_v28 = vld [vmem:[%s5124_s0 + $0xa0] sm:$0x33]  ;;  %v478_v43 = vsub.s32 5, %v4351_v42 }
   0x9   :  { %3710 = vmatprep.subr.msk.bf16.mxu1 %vm193_vm1, %v3702_v8  ;;  %3878 = vmatprep.subr.bf16.mxu0 %v4190_v2  ;;  %v4158_v29 = vld [vmem:[%s5124_s0 + $0x58] ss:$36 sps:$4 sm:$0xff]   ;;  %v3706_v30 = vcombine.high %v54_v28, %v54_v28  ;;  %v3705_v31 = vcombine.low %v54_v28, %v54_v28  ;;  %v55_v36 = vld [vmem:[%s5124_s0 + $0xa8] sm:$0x33]  ;;  %v4166_v37 = vld [vmem:[%s5124_s0 + $0x60] ss:$36 sps:$4 sm:$0xff]  }
   0xa   :  { %v4165_v33 = vld [vmem:[%s5124_s0 + $0x1c] ss:$36 sps:$4 sm:$0xff]   ;;  %v3708_v38 = vcombine.high %v55_v36, %v55_v36  ;;  %v3707_v39 = vcombine.low %v55_v36, %v55_v36  ;;  %v482_v46 = vsub.s32 6, %v4351_v42  ;;  %v486_v47 = vsub.s32 7, %v4351_v42  ;;  %26 = vst.msk [vmem:[#allocation2 + $0x30] sm:$0xff] %vm24_vm3, %v4189_v1  ;;  %s4195_s27 = smov 126  }
   0xb   :  { %66 = vperm.xlu0 %4133, %v58_v23   ;;  %v207_v32 = vsel %vm193_vm1, %v3705_v31, 0  ;;  %v4163_v34 = vld [vmem:[%s5124_s0 + $0x18] ss:$36 sps:$4 sm:$0xff]   ;;  %v4357_v44 = vld [vmem:[%s5127_s3] sm:$0xff]  ;;  %v458_v51 = vsub.s32 0, %v4351_v42  ;;  %v462_v53 = vsub.s32 1, %v4351_v42 }
   0xc   :  { %226 = vmatpush1.bf16.msra.mxu1 %v195_v9  ;;  %3879 = vmatpush3.bf16.msra.mxu0 %v219_v18  ;;  %v213_v40 = vsel %vm193_vm1, %v3707_v39, 0  ;;  %v4360_v45 = vrot.slane %v4357_v44, %v478_v43  ;;  %v4365_v48 = vrot.slane %v4357_v44, %v482_v46  ;;  %v4368_v49 = vrot.slane %v4357_v44, %v486_v47  ;;  %s4196_s28 = smov 96   ;;  %s4197_s29 = smov 95  }
   0xd   :  { %264 = vmatprep.subr.bf16.mxu1 %v4146_v11  ;;  %3884 = vmatprep.subr.bf16.mxu0 %v4190_v2  ;;  %v459_v56 = vrot.slane %v4357_v44, %v458_v51  ;;  %v463_v0 = vrot.slane %v4357_v44, %v462_v53  ;;  %vm27_vm4 = vcmask 539664   ;;  %vm554_vm5 = vcmask 1048080   ;;  %s4198_s2 = smov 94   ;;  %s4199_s30 = smov 64  }
   0xe   :  { %28 = vst.msk [vmem:[#allocation2 + $0x28] sm:$0xff] %vm27_vm4, %v4189_v1  ;;  %29 = vst.msk [vmem:[#allocation2 + $0x58] sm:$0xff] %vm27_vm4, %v4189_v1  ;;  %vm560_vm6 = vcmask 15360   ;;  %s4200_s7 = smov 63   ;;  %s4201_s8 = smov 62   ;;  %vm628_vm7 = vcmask 1039360  }
   0xf   :  { %3711 = vmatmul.mubr.msk.bf16.vlgmr.msra.gmra.mrb[0].mxu1 %vm189_vm2, %v4272_v13  ;;  %3881 = vmatmul.mubr.msk.bf16.vlgmr.msra.gmra.mrb[0].mxu0 %vm189_vm2, %v4272_v13  ;;  %vm639_vm8 = vcmask 130048   ;;  %vm925_vm9 = vcmask 1031168   ;;  %vm1096_vm10 = vcmask 785408   ;;  %vm1267_vm11 = vcmask 777216  }
  0x10   :  { %265 = vmatpush1.bf16.msra.mxu1 %v4144_v14  ;;  %296 = vmatprep.mubr.bf16.mxu1 %v4189_v1  ;;  %vm1438_vm12 = vcmask 769024   ;;  %vm1609_vm13 = vcmask 523264   ;;  %vm1780_vm14 = vcmask 515072   ;;  %vm1951_vm15 = vcmask 506880  }
  0x11   :  { %266 = vmatprep.subr.bf16.mxu1 %v4149_v16  ;;  %3886 = vmatprep.mubr.msk.bf16.mxu0 %vm4191_vm0, %v4190_v2  ;;  %v466_v16 = vsub.s32 2, %v4351_v42 }
  0x14   :  { %267 = vmatpush1.bf16.msra.mxu1 %v4147_v19 }
  0x15   :  { %3712 = vmatprep.subr.msk.bf16.mxu1 %vm193_vm1, %v3704_v21 }
  0x18   :  { %269 = vmatpush1.bf16.msra.mxu1 %v201_v24  ;;  %v470_v24 = vsub.s32 3, %v4351_v42 }
  0x19   :  { %307 = vmatprep.subr.bf16.mxu1 %v4156_v25 }
  0x1a   :  { %v471_v36 = vrot.slane %v4357_v44, %v470_v24 }
  0x1b   :  { %3713 = vmatmul.mubr.msk.bf16.vlgmr.msra.gmra.mrb[4].mxu1 %vm189_vm2, %v4272_v13 }
  0x1c   :  { %308 = vmatpush1.bf16.msra.mxu1 %v4154_v26  ;;  %339 = vmatprep.mubr.bf16.mxu1 %v4189_v1  ;;  %v467_v26 = vrot.slane %v4357_v44, %v466_v16 }
  0x1d   :  { %309 = vmatprep.subr.bf16.mxu1 %v4160_v27 }
  0x20   :  { %310 = vmatpush1.bf16.msra.mxu1 %v4158_v29 }
  0x21   :  { %3714 = vmatprep.subr.msk.bf16.mxu1 %vm193_vm1, %v3706_v30 }
  0x24   :  { %312 = vmatpush1.bf16.msra.mxu1 %v207_v32 }
  0x25   :  { %350 = vmatprep.subr.bf16.mxu1 %v4165_v33 }
  0x27   :  { %3715 = vmatmul.mubr.msk.bf16.vlgmr.msra.gmra.mrb[8].mxu1 %vm189_vm2, %v4272_v13 }
  0x28   :  { %351 = vmatpush1.bf16.msra.mxu1 %v4163_v34  ;;  %382 = vmatprep.mubr.bf16.mxu1 %v4189_v1 }
  0x29   :  { %352 = vmatprep.subr.bf16.mxu1 %v4168_v35 }
  0x2c   :  { %353 = vmatpush1.bf16.msra.mxu1 %v4166_v37 }
  0x2d   :  { %3716 = vmatprep.subr.msk.bf16.mxu1 %vm193_vm1, %v3708_v38 }
  0x30   :  { %355 = vmatpush1.bf16.msra.mxu1 %v213_v40 }
  0x33   :  { %3717 = vmatmul.mubr.msk.bf16.vlgmr.msra.gmra.mrb[12].mxu1 %vm189_vm2, %v4272_v13  ;;  %v3719_v13 = vld [vmem:[%s5127_s3 + $0x8] ss:$0 sm:$0xff]  ;;  %s4193_s3 = smov 2  }
  0x34   :  { %675 = vmatprep.mubr.bf16.mxu1 %v4189_v1 }
  0x86   :  { %v4374_v50 = vpop.permute.xlu0 %61 }
  0x8a   :  { %v4378_v54 = vpop.permute.xlu0 %66 }
  0xe2   :  { %v255_v52 = vpop.f32.mrb[0].mxu1  ;;  %v427_v7 = vpop.f32.mrb[0].mxu0 }
  0xe3   :  { %v256_v55 = vadd.f32 %v255_v52, %v4374_v50  ;;  %v257_v57 = vpop.f32.mrb[1].mxu1  ;;  %v428_v9 = vadd.f32 %v427_v7, %v4374_v50  ;;  %v3882_v10 = vpop.f32.mrb[1].mxu0  ;;  %v474_v52 = vsub.s32 4, %v4351_v42 }
  0xe4   :  { %v258_v58 = vadd.f32 %v257_v57, %v4374_v50  ;;  %v259_v59 = vpop.f32.mrb[2].mxu1  ;;  %v430_v14 = vpop.f32.mrb[2].mxu0 }
  0xe5   :  { %v434_v60 = vmax.f32 %v256_v55, 0.0  ;;  %v260_v61 = vadd.f32 %v259_v59, %v4378_v54  ;;  %v261_v62 = vpop.f32.mrb[3].mxu1  ;;  %v442_v17 = vmax.f32 %v428_v9, 0.0  ;;  %v431_v18 = vadd.f32 %v430_v14, %v4378_v54  ;;  %v3883_v19 = vpop.f32.mrb[3].mxu0 }
  0xe6   :  { %v435_v63 = vmax.f32 %v258_v58, 0.0  ;;  %v262_v3 = vadd.f32 %v261_v62, %v4378_v54 }
  0xe7   :  { %v501_v4 = vmul.f32 %v459_v56, %v434_v60  ;;  %v443_v5 = vmax.f32 %v260_v61, 0.0  ;;  %v4399_v21 = vmul.f32 %v3719_v13, %v442_v17  ;;  %v451_v22 = vmax.f32 %v431_v18, 0.0 }
  0xe8   :  { %v444_v6 = vmax.f32 %v262_v3, 0.0  ;;  %v4387_v11 = vmul.f32 %v463_v0, %v435_v63  ;;  %v475_v60 = vrot.slane %v4357_v44, %v474_v52 }
  0xe9   :  { %v510_v8 = vmul.f32 %v459_v56, %v443_v5  ;;  %v4404_v28 = vmul.f32 %v3719_v13, %v451_v22 }
  0xea   :  { %v4389_v12 = vmul.f32 %v463_v0, %v444_v6 }
  0xeb   :  { %v519_v15 = vpack.c.bf16 %v510_v8, %v501_v4  ;;  %v527_v34 = vpack.c.bf16 %v4404_v28, %v4399_v21 }
  0xec   :  { %v520_v20 = vpack.c.bf16 %v4389_v12, %v4387_v11 }
  0xed   :  { %533 = vrot.lane.b32.xlu0 %v519_v15, %s4192_s25 }
  0xee   :  { %v298_v23 = vpop.f32.mrb[4].mxu1 }
  0xef   :  { %v299_v25 = vadd.f32 %v298_v23, %v4374_v50  ;;  %v300_v27 = vpop.f32.mrb[5].mxu1 }
  0xf0   :  { %v301_v29 = vadd.f32 %v300_v27, %v4374_v50  ;;  %v302_v30 = vpop.f32.mrb[6].mxu1 }
  0xf1   :  { %v436_v31 = vmax.f32 %v299_v25, 0.0  ;;  %v303_v32 = vadd.f32 %v302_v30, %v4378_v54  ;;  %v304_v33 = vpop.f32.mrb[7].mxu1 }
  0xf2   :  { %v437_v35 = vmax.f32 %v301_v29, 0.0  ;;  %v305_v37 = vadd.f32 %v304_v33, %v4378_v54 }
  0xf3   :  { %v503_v38 = vmul.f32 %v467_v26, %v436_v31  ;;  %v445_v39 = vmax.f32 %v303_v32, 0.0 }
  0xf4   :  { %v446_v40 = vmax.f32 %v305_v37, 0.0  ;;  %v504_v43 = vmul.f32 %v471_v36, %v437_v35 }
  0xf5   :  { %v512_v41 = vmul.f32 %v467_v26, %v445_v39  ;;  %v4509_v39 = vld [vmem:[%s5128_s4 + $0x8] sm:$0xff]  }
  0xf6   :  { %v513_v46 = vmul.f32 %v471_v36, %v446_v40 }
  0xf7   :  { %v521_v47 = vpack.c.bf16 %v512_v41, %v503_v38 }
  0xf8   :  { %v522_v51 = vpack.c.bf16 %v513_v46, %v504_v43 }
  0xf9   :  { %537 = vrot.lane.b32.xlu0 %v521_v47, %s4192_s25 }
  0xfa   :  { %v341_v53 = vpop.f32.mrb[8].mxu1  ;;  %539 = vrot.lane.b32.xlu1 %v522_v51, %s4192_s25 }
  0xfb   :  { %v342_v55 = vadd.f32 %v341_v53, %v4374_v50  ;;  %v343_v56 = vpop.f32.mrb[9].mxu1 }
  0xfc   :  { %v344_v57 = vadd.f32 %v343_v56, %v4374_v50  ;;  %v345_v58 = vpop.f32.mrb[10].mxu1 }
  0xfd   :  { %v438_v59 = vmax.f32 %v342_v55, 0.0  ;;  %v346_v61 = vadd.f32 %v345_v58, %v4378_v54  ;;  %v347_v62 = vpop.f32.mrb[11].mxu1  ;;  %v4538_v55 = vld [vmem:[%s5128_s4] sm:$0xff]  }
  0xfe   :  { %v439_v63 = vmax.f32 %v344_v57, 0.0  ;;  %v348_v0 = vadd.f32 %v347_v62, %v4378_v54 }
  0xff   :  { %v447_v3 = vmax.f32 %v346_v61, 0.0  ;;  %v505_v5 = vmul.f32 %v475_v60, %v438_v59  ;;  %v4560_v61 = vld [vmem:[%s5128_s4 + $0x10] sm:$0xff]  }
 0x100   :  { %v506_v42 = vmul.f32 %v4360_v45, %v439_v63  ;;  %v448_v4 = vmax.f32 %v348_v0, 0.0 }
 0x101   :  { %v514_v6 = vmul.f32 %v475_v60, %v447_v3 }
 0x102   :  { %v515_v7 = vmul.f32 %v4360_v45, %v448_v4 }
 0x103   :  { %v523_v8 = vpack.c.bf16 %v514_v6, %v505_v5 }
 0x104   :  { %v524_v9 = vpack.c.bf16 %v515_v7, %v506_v42  ;;  %v4588_v7 = vld [vmem:[%s5128_s4 + $0x18] sm:$0xff]  }
 0x105   :  { %541 = vrot.lane.b32.xlu1 %v523_v8, %s4192_s25 }
 0x106   :  { %v384_v10 = vpop.f32.mrb[12].mxu1 }
 0x107   :  { %v385_v44 = vadd.f32 %v384_v10, %v4374_v50  ;;  %v386_v11 = vpop.f32.mrb[13].mxu1 }
 0x108   :  { %v387_v12 = vadd.f32 %v386_v11, %v4374_v50  ;;  %v388_v13 = vpop.f32.mrb[14].mxu1 }
 0x109   :  { %v440_v14 = vmax.f32 %v385_v44, 0.0  ;;  %v389_v15 = vadd.f32 %v388_v13, %v4378_v54  ;;  %v390_v16 = vpop.f32.mrb[15].mxu1  ;;  %535 = vrot.lane.b32.xlu1 %v520_v20, %s4192_s25 }
 0x10a   :  { %v441_v17 = vmax.f32 %v387_v12, 0.0  ;;  %v391_v45 = vadd.f32 %v390_v16, %v4378_v54 }
 0x10b   :  { %v507_v18 = vmul.f32 %v4365_v48, %v440_v14  ;;  %v449_v19 = vmax.f32 %v389_v15, 0.0  ;;  %v4614_v14 = vld [vmem:[%s5128_s4 + $0x20] sm:$0xff]  }
 0x10c   :  { %v508_v22 = vmul.f32 %v4368_v49, %v441_v17  ;;  %v450_v23 = vmax.f32 %v391_v45, 0.0 }
 0x10d   :  { %v516_v24 = vmul.f32 %v4365_v48, %v449_v19  ;;  %566 = vrot.lane.b32.xlu1 %v523_v8, %s4193_s3 }
 0x10e   :  { %v517_v50 = vmul.f32 %v4368_v49, %v450_v23 }
 0x10f   :  { %v525_v25 = vpack.c.bf16 %v516_v24, %v507_v18  ;;  %v4639_v18 = vld [vmem:[%s5128_s4 + $0x28] sm:$0xff]  }
 0x110   :  { %v526_v26 = vpack.c.bf16 %v517_v50, %v508_v22  ;;  %v4666_v50 = vld [vmem:[%s5128_s4 + $0x30] sm:$0xff]  }
 0x15f   :  { %v534_v20 = vpop.permute.xlu0 %533 }
 0x160   :  { %555 = vst.msk [vmem:[#allocation2] sm:$0xff] %vm554_vm5, %v534_v20 }
 0x167   :  { %v4474_v21 = vld [vmem:[#allocation2] sm:$0xff] }
 0x16b   :  { %v538_v54 = vpop.permute.xlu0 %537 }
 0x16c   :  { %v540_v27 = vpop.permute.xlu1 %539 }
 0x16d   :  { %v4437_v29 = vsel %vm24_vm3, %v538_v54, %v540_v27 }
 0x177   :  { %v542_v30 = vpop.permute.xlu1 %541 }
 0x178   :  { %v4440_v48 = vsel %vm24_vm3, %v540_v27, %v542_v30  ;;  %561 = vst.msk [vmem:[#allocation2 + $0x28] sm:$0xff] %vm560_vm6, %v542_v30  ;;  %v4692_v30 = vld [vmem:[%s5128_s4 + $0x38] sm:$0xff]  }
 0x179   :  { %624 = vrot.lane.b32.xlu1 %v4440_v48, %s4194_s26 }
 0x17b   :  { %v536_v49 = vpop.permute.xlu1 %535 }
 0x17c   :  { %v4446_v31 = vsel %vm24_vm3, %v534_v20, %v536_v49  ;;  %v4449_v32 = vsel %vm24_vm3, %v536_v49, %v538_v54 }
 0x17d   :  { %570 = vrot.lane.b32.xlu1 %v525_v25, %s4193_s3 }
 0x17f   :  { %v567_v33 = vpop.permute.xlu1 %566  ;;  %v604_v35 = vld [vmem:[#allocation2 + $0x28] sm:$0xff] }
 0x180   :  { %588 = vst.msk [vmem:[#allocation2 + $0x30] sm:$0xff] %vm554_vm5, %v567_v33  ;;  %626 = vrot.lane.b32.xlu0 %v604_v35, %s4194_s26 }
 0x181   :  { %574 = vrot.lane.b32.xlu1 %v527_v34, %s4193_s3 }
 0x184   :  { %568 = vrot.lane.b32.xlu0 %v524_v9, %s4193_s3 }
 0x185   :  { %923 = vrot.lane.b32.xlu1 %v604_v35, %s4195_s27 }
 0x187   :  { %v4501_v28 = vld [vmem:[#allocation2 + $0x30] sm:$0xff] }
 0x188   :  { %572 = vrot.lane.b32.xlu0 %v526_v26, %s4193_s3 }
 0x189   :  { %1094 = vrot.lane.b32.xlu1 %v604_v35, %s4196_s28 }
 0x18c   :  { %921 = vrot.lane.b32.xlu0 %v4440_v48, %s4195_s27 }
 0x18d   :  { %620 = vrot.lane.b32.xlu1 %v4449_v32, %s4194_s26 }
 0x190   :  { %618 = vrot.lane.b32.xlu0 %v4446_v31, %s4194_s26 }
 0x191   :  { %1263 = vrot.lane.b32.xlu1 %v4440_v48, %s4197_s29 }
 0x194   :  { %1092 = vrot.lane.b32.xlu0 %v4440_v48, %s4196_s28 }
 0x195   :  { %622 = vrot.lane.b32.xlu1 %v4437_v29, %s4194_s26 }
 0x198   :  { %616 = vrot.lane.b32.xlu0 %v4474_v21, %s4194_s26 }
 0x199   :  { %1436 = vrot.lane.b32.xlu1 %v604_v35, %s4198_s2 }
 0x19c   :  { %1265 = vrot.lane.b32.xlu0 %v604_v35, %s4197_s29 }
 0x19d   :  { %1607 = vrot.lane.b32.xlu1 %v604_v35, %s4199_s30 }
 0x1a0   :  { %1434 = vrot.lane.b32.xlu0 %v4440_v48, %s4198_s2 }
 0x1a1   :  { %1778 = vrot.lane.b32.xlu1 %v604_v35, %s4200_s7 }
 0x1a4   :  { %1605 = vrot.lane.b32.xlu0 %v4440_v48, %s4199_s30 }
 0x1a5   :  { %917 = vrot.lane.b32.xlu1 %v4449_v32, %s4195_s27 }
 0x1a8   :  { %915 = vrot.lane.b32.xlu0 %v4446_v31, %s4195_s27 }
 0x1a9   :  { %919 = vrot.lane.b32.xlu1 %v4437_v29, %s4195_s27 }
 0x1ac   :  { %1776 = vrot.lane.b32.xlu0 %v4440_v48, %s4200_s7 }
 0x1ad   :  { %1947 = vrot.lane.b32.xlu1 %v4440_v48, %s4201_s8 }
 0x1b0   :  { %913 = vrot.lane.b32.xlu0 %v4474_v21, %s4195_s27 }
 0x1b1   :  { %1086 = vrot.lane.b32.xlu1 %v4446_v31, %s4196_s28 }
 0x1b4   :  { %1949 = vrot.lane.b32.xlu0 %v604_v35, %s4201_s8 }
 0x1b8   :  { %2165 = vrot.lane.b32.xlu0 %v4501_v28, %s4194_s26 }
 0x1eb   :  { %v625_v34 = vpop.permute.xlu1 %624 }
 0x1ef   :  { %v571_v36 = vpop.permute.xlu1 %570 }
 0x1f2   :  { %v627_v37 = vpop.permute.xlu0 %626 }
 0x1f3   :  { %v633_v38 = vsel %vm628_vm7, %v625_v34, %v627_v37  ;;  %v575_v40 = vpop.permute.xlu1 %574 }
 0x1f4   :  { %3885 = vmatpush3.bf16.msra.mxu0 %v633_v38  ;;  %593 = vst.msk [vmem:[#allocation2 + $0x58] sm:$0xff] %vm560_vm6, %v575_v40 }
 0x1f5   :  { %3890 = vmatprep.subr.bf16.mxu0 %v4190_v2 }
 0x1f6   :  { %v569_v41 = vpop.permute.xlu0 %568 }
 0x1f7   :  { %v4514_v43 = vsel %vm560_vm6, %v567_v33, %v569_v41  ;;  %v4517_v46 = vsel %vm560_vm6, %v569_v41, %v571_v36  ;;  %3887 = vmatmul.mubr.msk.bf16.vlgmr.msra.gmra.mrb[4].mxu0 %vm639_vm8, %v4509_v39  ;;  %v924_v47 = vpop.permute.xlu1 %923 }
 0x1f8   :  { %3891 = vmatpush3.bf16.msra.mxu0 %v4440_v48  ;;  %3892 = vmatprep.mubr.msk.bf16.mxu0 %vm4191_vm0, %v4190_v2 }
 0x1f9   :  { %3896 = vmatprep.subr.bf16.mxu0 %v4190_v2  ;;  %2167 = vrot.lane.b32.xlu0 %v4514_v43, %s4194_s26 }
 0x1fa   :  { %v573_v51 = vpop.permute.xlu0 %572  ;;  %2169 = vrot.lane.b32.xlu1 %v4517_v46, %s4194_s26 }
 0x1fb   :  { %v4530_v52 = vsel %vm560_vm6, %v571_v36, %v573_v51  ;;  %v4533_v53 = vsel %vm560_vm6, %v573_v51, %v575_v40  ;;  %v1095_v56 = vpop.permute.xlu1 %1094  ;;  %v4567_v0 = vld [vmem:[#allocation2 + $0x58] sm:$0xff] }
 0x1fd   :  { %1088 = vrot.lane.b32.xlu0 %v4449_v32, %s4196_s28 }
 0x1fe   :  { %v4542_v57 = vpop.permute.xlu0 %921  ;;  %1084 = vrot.lane.b32.xlu1 %v4474_v21, %s4196_s28 }
 0x1ff   :  { %v930_v58 = vsel %vm925_vm9, %v4542_v57, %v924_v47  ;;  %3893 = vmatmul.mubr.msk.bf16.vlgmr.msra.gmra.mrb[8].mxu0 %vm639_vm8, %v4538_v55  ;;  %v621_v59 = vpop.permute.xlu1 %620 }
 0x200   :  { %3897 = vmatpush3.bf16.msra.mxu0 %v930_v58  ;;  %3898 = vmatprep.mubr.msk.bf16.mxu0 %vm4191_vm0, %v4190_v2 }
 0x201   :  { %3902 = vmatprep.subr.bf16.mxu0 %v4190_v2  ;;  %2171 = vrot.lane.b32.xlu0 %v4530_v52, %s4194_s26 }
 0x202   :  { %v619_v60 = vpop.permute.xlu0 %618  ;;  %2173 = vrot.lane.b32.xlu1 %v4533_v53, %s4194_s26 }
 0x203   :  { %v630_v62 = vsel %vm628_vm7, %v619_v60, %v621_v59  ;;  %v4563_v63 = vpop.permute.xlu1 %1263 }
 0x204   :  { %643 = vmatprep.subr.bf16.mxu1 %v630_v62 }
 0x205   :  { %1090 = vrot.lane.b32.xlu0 %v4437_v29, %s4196_s28 }
 0x206   :  { %v4569_v3 = vpop.permute.xlu0 %1092  ;;  %2175 = vrot.lane.b32.xlu1 %v4567_v0, %s4194_s26 }
 0x207   :  { %v1101_v42 = vsel %vm1096_vm10, %v4569_v3, %v1095_v56  ;;  %3899 = vmatmul.mubr.msk.bf16.vlgmr.msra.gmra.mrb[12].mxu0 %vm639_vm8, %v4560_v61  ;;  %v623_v4 = vpop.permute.xlu1 %622 }
 0x208   :  { %3903 = vmatpush3.bf16.msra.mxu0 %v1101_v42  ;;  %3904 = vmatprep.mubr.msk.bf16.mxu0 %vm4191_vm0, %v4190_v2  ;;  %v632_v8 = vsel %vm628_vm7, %v623_v4, %v625_v34  ;;  %v631_v11 = vsel %vm628_vm7, %v621_v59, %v623_v4  ;;  %v4717_v34 = vld [vmem:[%s5128_s4 + $0x40] sm:$0xff]  }
 0x209   :  { %3908 = vmatprep.subr.bf16.mxu0 %v4190_v2  ;;  %1257 = vrot.lane.b32.xlu0 %v4446_v31, %s4197_s29 }
 0x20a   :  { %v617_v5 = vpop.permute.xlu0 %616  ;;  %1259 = vrot.lane.b32.xlu1 %v4449_v32, %s4197_s29 }
 0x20b   :  { %v629_v6 = vsel %vm628_vm7, %v617_v5, %v619_v60  ;;  %v1437_v9 = vpop.permute.xlu1 %1436 }
 0x20c   :  { %644 = vmatpush1.bf16.msra.mxu1 %v629_v6 }
 0x20d   :  { %686 = vmatprep.subr.bf16.mxu1 %v632_v8  ;;  %1255 = vrot.lane.b32.xlu0 %v4474_v21, %s4197_s29 }
 0x20e   :  { %v1266_v10 = vpop.permute.xlu0 %1265  ;;  %1261 = vrot.lane.b32.xlu1 %v4437_v29, %s4197_s29 }
 0x20f   :  { %v1272_v44 = vsel %vm1267_vm11, %v4563_v63, %v1266_v10  ;;  %3723 = vmatmul.mubr.msk.bf16.vlgmr.msra.gmra.mrb[16].mxu1 %vm639_vm8, %v4509_v39  ;;  %3905 = vmatmul.mubr.msk.bf16.vlgmr.msra.gmra.mrb[16].mxu0 %vm639_vm8, %v4588_v7  ;;  %v1608_v13 = vpop.permute.xlu1 %1607 }
 0x210   :  { %3909 = vmatpush3.bf16.msra.mxu0 %v1272_v44  ;;  %687 = vmatpush1.bf16.msra.mxu1 %v631_v11 }
 0x211   :  { %778 = vmatprep.subr.bf16.mxu1 %v4446_v31  ;;  %718 = vmatprep.mubr.bf16.mxu1 %v4189_v1 }
 0x212   :  { %v4604_v12 = vpop.permute.xlu0 %1434  ;;  %3910 = vmatprep.mubr.msk.bf16.mxu0 %vm4191_vm0, %v4190_v2  ;;  %3914 = vmatprep.subr.bf16.mxu0 %v4190_v2 }
 0x213   :  { %1428 = vrot.lane.b32.xlu0 %v4446_v31, %s4198_s2  ;;  %1430 = vrot.lane.b32.xlu1 %v4449_v32, %s4198_s2  ;;  %v1443_v16 = vsel %vm1438_vm12, %v4604_v12, %v1437_v9  ;;  %v1779_v17 = vpop.permute.xlu1 %1778 }
 0x216   :  { %v4618_v15 = vpop.permute.xlu0 %1605 }
 0x217   :  { %3724 = vmatmul.mubr.msk.bf16.vlgmr.msra.gmra.mrb[20].mxu1 %vm639_vm8, %v4509_v39  ;;  %3911 = vmatmul.mubr.msk.bf16.vlgmr.msra.gmra.mrb[20].mxu0 %vm639_vm8, %v4614_v14  ;;  %v1614_v22 = vsel %vm1609_vm13, %v4618_v15, %v1608_v13  ;;  %v918_v23 = vpop.permute.xlu1 %917  ;;  %v4180_v39 = vld [vmem:[%s5128_s4 + $0x8] sm:$0xff]  }
 0x218   :  { %779 = vmatpush1.bf16.msra.mxu1 %v4474_v21  ;;  %3915 = vmatpush3.bf16.msra.mxu0 %v1443_v16 }
 0x219   :  { %821 = vmatprep.subr.bf16.mxu1 %v4437_v29  ;;  %1426 = vrot.lane.b32.xlu0 %v4474_v21, %s4198_s2 }
 0x21a   :  { %v916_v45 = vpop.permute.xlu0 %915  ;;  %1432 = vrot.lane.b32.xlu1 %v4437_v29, %s4198_s2  ;;  %810 = vmatprep.mubr.bf16.mxu1 %v4189_v1 }
 0x21b   :  { %3916 = vmatprep.mubr.msk.bf16.mxu0 %vm4191_vm0, %v4190_v2  ;;  %3920 = vmatprep.subr.bf16.mxu0 %v4190_v2  ;;  %v927_v24 = vsel %vm925_vm9, %v916_v45, %v918_v23  ;;  %v920_v26 = vpop.permute.xlu1 %919 }
 0x21c   :  { %v929_v27 = vsel %vm925_vm9, %v920_v26, %v4542_v57  ;;  %v928_v33 = vsel %vm925_vm9, %v918_v23, %v920_v26 }
 0x21d   :  { %2461 = vrot.lane.b32.xlu0 %v4514_v43, %s4195_s27 }
 0x21e   :  { %v4643_v19 = vpop.permute.xlu0 %1776  ;;  %2463 = vrot.lane.b32.xlu1 %v4517_v46, %s4195_s27 }
 0x21f   :  { %3727 = vmatmul.mubr.msk.bf16.vlgmr.msra.gmra.mrb[16].mxu1 %vm639_vm8, %v4538_v55  ;;  %3917 = vmatmul.mubr.msk.bf16.vlgmr.msra.gmra.mrb[24].mxu0 %vm639_vm8, %v4639_v18  ;;  %v1785_v20 = vsel %vm1780_vm14, %v4643_v19, %v1779_v17  ;;  %v4696_v49 = vpop.permute.xlu1 %1947 }
 0x220   :  { %822 = vmatpush1.bf16.msra.mxu1 %v4449_v32  ;;  %3921 = vmatpush3.bf16.msra.mxu0 %v1614_v22 }
 0x221   :  { %939 = vmatprep.subr.bf16.mxu1 %v927_v24  ;;  %2459 = vrot.lane.b32.xlu0 %v4501_v28, %s4195_s27 }
 0x222   :  { %1599 = vrot.lane.b32.xlu1 %v4446_v31, %s4199_s30  ;;  %853 = vmatprep.mubr.bf16.mxu1 %v4189_v1  ;;  %v914_v25 = vpop.permute.xlu0 %913 }
 0x223   :  { %3922 = vmatprep.mubr.msk.bf16.mxu0 %vm4191_vm0, %v4190_v2  ;;  %3926 = vmatprep.subr.bf16.mxu0 %v4190_v2  ;;  %v926_v54 = vsel %vm925_vm9, %v914_v25, %v916_v45 }
 0x225   :  { %1601 = vrot.lane.b32.xlu0 %v4449_v32, %s4199_s30 }
 0x226   :  { %1597 = vrot.lane.b32.xlu1 %v4474_v21, %s4199_s30  ;;  %v1950_v48 = vpop.permute.xlu0 %1949 }
 0x227   :  { %3728 = vmatmul.mubr.msk.bf16.vlgmr.msra.gmra.mrb[20].mxu1 %vm639_vm8, %v4538_v55  ;;  %3923 = vmatmul.mubr.msk.bf16.vlgmr.msra.gmra.mrb[28].mxu0 %vm639_vm8, %v4666_v50  ;;  %v1956_v35 = vsel %vm1951_vm15, %v4696_v49, %v1950_v48 }
 0x228   :  { %940 = vmatpush1.bf16.msra.mxu1 %v926_v54  ;;  %3927 = vmatpush3.bf16.msra.mxu0 %v1785_v20 }
 0x229   :  { %982 = vmatprep.subr.bf16.mxu1 %v929_v27  ;;  %1603 = vrot.lane.b32.xlu0 %v4437_v29, %s4199_s30 }
 0x22a   :  { %2630 = vrot.lane.b32.xlu1 %v4514_v43, %s4196_s28  ;;  %971 = vmatprep.mubr.bf16.mxu1 %v4189_v1 }
 0x22b   :  { %3928 = vmatprep.mubr.msk.bf16.mxu0 %vm4191_vm0, %v4190_v2  ;;  %3932 = vmatprep.subr.bf16.mxu0 %v4190_v2 }
 0x22d   :  { %2465 = vrot.lane.b32.xlu0 %v4530_v52, %s4195_s27 }
 0x22e   :  { %2467 = vrot.lane.b32.xlu1 %v4533_v53, %s4195_s27 }
 0x22f   :  { %3733 = vmatmul.mubr.msk.bf16.vlgmr.msra.gmra.mrb[16].mxu1 %vm639_vm8, %v4560_v61  ;;  %3929 = vmatmul.mubr.msk.bf16.vlgmr.msra.gmra.mrb[32].mxu0 %vm639_vm8, %v4692_v30 }
 0x230   :  { %983 = vmatpush1.bf16.msra.mxu1 %v928_v33  ;;  %3933 = vmatpush3.bf16.msra.mxu0 %v1956_v35  ;;  %v4888_v33 = vld [vmem:[%s5128_s4 + $0x10] sm:$0xff]  }
 0x231   :  { %2632 = vrot.lane.b32.xlu0 %v4517_v46, %s4196_s28  ;;  %3934 = vmatprep.mubr.msk.bf16.mxu0 %vm4191_vm0, %v4190_v2 }
 0x232   :  { %2628 = vrot.lane.b32.xlu1 %v4501_v28, %s4196_s28  ;;  %1014 = vmatprep.mubr.bf16.mxu1 %v4189_v1 }
 0x235   :  { %1770 = vrot.lane.b32.xlu0 %v4446_v31, %s4200_s7 }
 0x236   :  { %1772 = vrot.lane.b32.xlu1 %v4449_v32, %s4200_s7 }
 0x237   :  { %3935 = vmatmul.mubr.msk.bf16.vlgmr.msra.gmra.mrb[36].mxu0 %vm639_vm8, %v4717_v34  ;;  %3734 = vmatmul.mubr.msk.bf16.vlgmr.msra.gmra.mrb[20].mxu1 %vm639_vm8, %v4560_v61 }
 0x238   :  { %2222 = vmatprep.mubr.bf16.mxu0 %v4189_v1  ;;  %1142 = vmatprep.mubr.bf16.mxu1 %v4189_v1 }
 0x239   :  { %1768 = vrot.lane.b32.xlu0 %v4474_v21, %s4200_s7 }
 0x23a   :  { %1774 = vrot.lane.b32.xlu1 %v4437_v29, %s4200_s7 }
 0x23d   :  { %2636 = vrot.lane.b32.xlu0 %v4533_v53, %s4196_s28 }
 0x23e   :  { %2634 = vrot.lane.b32.xlu1 %v4530_v52, %s4196_s28 }
 0x241   :  { %2799 = vrot.lane.b32.xlu0 %v4514_v43, %s4197_s29 }
 0x242   :  { %2801 = vrot.lane.b32.xlu1 %v4517_v46, %s4197_s29 }
 0x245   :  { %2797 = vrot.lane.b32.xlu0 %v4501_v28, %s4197_s29 }
 0x246   :  { %1941 = vrot.lane.b32.xlu1 %v4446_v31, %s4201_s8  ;;  %v1087_v31 = vpop.permute.xlu1 %1086 }
 0x249   :  { %1943 = vrot.lane.b32.xlu0 %v4449_v32, %s4201_s8 }
 0x24a   :  { %1939 = vrot.lane.b32.xlu1 %v4474_v21, %s4201_s8 }
 0x24d   :  { %2803 = vrot.lane.b32.xlu0 %v4530_v52, %s4197_s29 }
 0x24e   :  { %2805 = vrot.lane.b32.xlu1 %v4533_v53, %s4197_s29 }
 0x251   :  { %1945 = vrot.lane.b32.xlu0 %v4437_v29, %s4201_s8  ;;  %v2166_v29 = vpop.permute.xlu0 %2165 }
 0x252   :  { %2968 = vrot.lane.b32.xlu1 %v4514_v43, %s4198_s2 }
 0x255   :  { %2970 = vrot.lane.b32.xlu0 %v4517_v46, %s4198_s2 }
 0x256   :  { %2966 = vrot.lane.b32.xlu1 %v4501_v28, %s4198_s2 }
 0x259   :  { %2469 = vrot.lane.b32.xlu0 %v4567_v0, %s4195_s27 }
 0x25a   :  { %2972 = vrot.lane.b32.xlu1 %v4530_v52, %s4198_s2 }
 0x25d   :  { %2974 = vrot.lane.b32.xlu0 %v4533_v53, %s4198_s2 }
 0x25e   :  { %2638 = vrot.lane.b32.xlu1 %v4567_v0, %s4196_s28 }
 0x261   :  { %3137 = vrot.lane.b32.xlu0 %v4514_v43, %s4199_s30 }
 0x262   :  { %3139 = vrot.lane.b32.xlu1 %v4517_v46, %s4199_s30 }
 0x265   :  { %3135 = vrot.lane.b32.xlu0 %v4501_v28, %s4199_s30 }
 0x266   :  { %2807 = vrot.lane.b32.xlu1 %v4567_v0, %s4197_s29 }
 0x269   :  { %3141 = vrot.lane.b32.xlu0 %v4530_v52, %s4199_s30 }
 0x26a   :  { %3143 = vrot.lane.b32.xlu1 %v4533_v53, %s4199_s30 }
 0x26b   :  { %v2168_v32 = vpop.permute.xlu0 %2167 }
 0x26c   :  { %v2177_v21 = vsel %vm628_vm7, %v2166_v29, %v2168_v32  ;;  %v2170_v36 = vpop.permute.xlu1 %2169 }
 0x26d   :  { %2976 = vrot.lane.b32.xlu0 %v4567_v0, %s4198_s2  ;;  %v2178_v37 = vsel %vm628_vm7, %v2168_v32, %v2170_v36 }
 0x26e   :  { %3306 = vrot.lane.b32.xlu1 %v4514_v43, %s4200_s7  ;;  %2190 = vmatprep.subr.bf16.mxu0 %v2178_v37 }
 0x26f   :  { %2191 = vmatpush1.bf16.msra.mxu0 %v2177_v21  ;;  %v1089_v38 = vpop.permute.xlu0 %1088 }
 0x270   :  { %v1085_v40 = vpop.permute.xlu1 %1084  ;;  %v1098_v41 = vsel %vm1096_vm10, %v1087_v31, %v1089_v38 }
 0x271   :  { %3308 = vrot.lane.b32.xlu0 %v4517_v46, %s4200_s7  ;;  %v1097_v47 = vsel %vm1096_vm10, %v1085_v40, %v1087_v31  ;;  %1110 = vmatprep.subr.bf16.mxu1 %v1098_v41 }
 0x272   :  { %3304 = vrot.lane.b32.xlu1 %v4501_v28, %s4200_s7  ;;  %1111 = vmatpush1.bf16.msra.mxu1 %v1097_v47 }
 0x273   :  { %3775 = vmatmul.mubr.msk.bf16.vlgmr.msra.gmra.mrb[40].mxu0 %vm639_vm8, %v4180_v39  ;;  %v2172_v51 = vpop.permute.xlu0 %2171 }
 0x274   :  { %v2179_v55 = vsel %vm628_vm7, %v2170_v36, %v2172_v51  ;;  %v2174_v56 = vpop.permute.xlu1 %2173  ;;  %2265 = vmatprep.mubr.bf16.mxu0 %v4189_v1 }
 0x275   :  { %3145 = vrot.lane.b32.xlu0 %v4567_v0, %s4199_s30  ;;  %3739 = vmatmul.mubr.msk.bf16.vlgmr.msra.gmra.mrb[16].mxu1 %vm639_vm8, %v4588_v7  ;;  %v2180_v57 = vsel %vm628_vm7, %v2172_v51, %v2174_v56 }
 0x276   :  { %3310 = vrot.lane.b32.xlu1 %v4530_v52, %s4200_s7  ;;  %2233 = vmatprep.subr.bf16.mxu0 %v2180_v57 }
 0x277   :  { %2234 = vmatpush1.bf16.msra.mxu0 %v2179_v55  ;;  %v1091_v58 = vpop.permute.xlu0 %1090  ;;  %1185 = vmatprep.mubr.bf16.mxu1 %v4189_v1 }
 0x278   :  { %v1099_v59 = vsel %vm1096_vm10, %v1089_v38, %v1091_v58  ;;  %v2176_v60 = vpop.permute.xlu1 %2175  ;;  %v1100_v61 = vsel %vm1096_vm10, %v1091_v58, %v4569_v3  ;;  %3938 = vmatprep.subr.bf16.mxu0 %v4190_v2 }
 0x279   :  { %3312 = vrot.lane.b32.xlu0 %v4533_v53, %s4200_s7  ;;  %v2181_v62 = vsel %vm628_vm7, %v2174_v56, %v2176_v60  ;;  %1153 = vmatprep.subr.bf16.mxu1 %v1100_v61  ;;  %v4919_v56 = vld [vmem:[%s5128_s4 + $0x18] sm:$0xff]  }
 0x27a   :  { %3314 = vrot.lane.b32.xlu1 %v4567_v0, %s4200_s7  ;;  %1154 = vmatpush1.bf16.msra.mxu1 %v1099_v59 }
 0x27b   :  { %3776 = vmatmul.mubr.msk.bf16.vlgmr.msra.gmra.mrb[44].mxu0 %vm639_vm8, %v4180_v39  ;;  %v1258_v42 = vpop.permute.xlu0 %1257 }
 0x27c   :  { %3939 = vmatpush3.bf16.msra.mxu0 %v2181_v62  ;;  %v1260_v4 = vpop.permute.xlu1 %1259  ;;  %3940 = vmatprep.mubr.msk.bf16.mxu0 %vm4191_vm0, %v4190_v2 }
 0x27d   :  { %3475 = vrot.lane.b32.xlu0 %v4514_v43, %s4201_s8  ;;  %2325 = vmatprep.subr.bf16.mxu0 %v4514_v43  ;;  %v1269_v3 = vsel %vm1267_vm11, %v1258_v42, %v1260_v4 }
 0x27e   :  { %3477 = vrot.lane.b32.xlu1 %v4517_v46, %s4201_s8  ;;  %3740 = vmatmul.mubr.msk.bf16.vlgmr.msra.gmra.mrb[20].mxu1 %vm639_vm8, %v4588_v7 }
 0x27f   :  { %1281 = vmatprep.subr.bf16.mxu1 %v1269_v3  ;;  %v1256_v5 = vpop.permute.xlu0 %1255  ;;  %1313 = vmatprep.mubr.bf16.mxu1 %v4189_v1 }
 0x280   :  { %v1268_v6 = vsel %vm1267_vm11, %v1256_v5, %v1258_v42  ;;  %v1262_v8 = vpop.permute.xlu1 %1261 }
 0x281   :  { %3473 = vrot.lane.b32.xlu0 %v4501_v28, %s4201_s8  ;;  %1282 = vmatpush1.bf16.msra.mxu1 %v1268_v6  ;;  %v1271_v43 = vsel %vm1267_vm11, %v1262_v8, %v4563_v63  ;;  %v1270_v10 = vsel %vm1267_vm11, %v1260_v4, %v1262_v8  ;;  %v2102_v63 = vld [vmem:[%s5129_s5] sm:$0xff] }
 0x282   :  { %3479 = vrot.lane.b32.xlu1 %v4530_v52, %s4201_s8  ;;  %1324 = vmatprep.subr.bf16.mxu1 %v1271_v43 }
 0x283   :  { %3941 = vmatmul.mubr.msk.bf16.vlgmr.msra.gmra.mrb[48].mxu0 %vm639_vm8, %v4180_v39 }
 0x284   :  { %2326 = vmatpush1.bf16.msra.mxu0 %v4501_v28  ;;  %2357 = vmatprep.mubr.bf16.mxu0 %v4189_v1 }
 0x285   :  { %3481 = vrot.lane.b32.xlu0 %v4533_v53, %s4201_s8  ;;  %2368 = vmatprep.subr.bf16.mxu0 %v4530_v52  ;;  %v1429_v7 = vpop.permute.xlu0 %1428  ;;  %v1431_v9 = vpop.permute.xlu1 %1430  ;;  %v4181_v52 = vld [vmem:[%s5128_s4] sm:$0xff]  }
 0x286   :  { %3483 = vrot.lane.b32.xlu1 %v4567_v0, %s4201_s8  ;;  %3745 = vmatmul.mubr.msk.bf16.vlgmr.msra.gmra.mrb[16].mxu1 %vm639_vm8, %v4614_v14  ;;  %v1440_v28 = vsel %vm1438_vm12, %v1429_v7, %v1431_v9  ;;  %v2103_v0 = vld [vmem:[%s5129_s5 + $0x8] sm:$0xff] }
 0x287   :  { %1325 = vmatpush1.bf16.msra.mxu1 %v1270_v10  ;;  %1356 = vmatprep.mubr.bf16.mxu1 %v4189_v1 }
 0x288   :  { %1452 = vmatprep.subr.bf16.mxu1 %v1440_v28 }
 0x289   :  { %2106 = vperm.xlu0 %4133, %v2102_v63  }
 0x28a   :  { %2111 = vperm.xlu1 %4134, %v2103_v0  }
 0x28b   :  { %v1427_v44 = vpop.permute.xlu0 %1426  ;;  %3779 = vmatmul.mubr.msk.bf16.vlgmr.msra.gmra.mrb[40].mxu0 %vm639_vm8, %v4181_v52 }
 0x28c   :  { %v1433_v11 = vpop.permute.xlu1 %1432  ;;  %2369 = vmatpush1.bf16.msra.mxu0 %v4517_v46  ;;  %2400 = vmatprep.mubr.bf16.mxu0 %v4189_v1  ;;  %v1439_v13 = vsel %vm1438_vm12, %v1427_v44, %v1429_v7  ;;  %v4944_v7 = vld [vmem:[%s5128_s4 + $0x20] sm:$0xff]  }
 0x28d   :  { %3639 = vperm.xlu0 %4133, %v2102_v63   ;;  %3944 = vmatprep.subr.bf16.mxu0 %v4190_v2  ;;  %v1442_v17 = vsel %vm1438_vm12, %v1433_v11, %v4604_v12 }
 0x28e   :  { %3746 = vmatmul.mubr.msk.bf16.vlgmr.msra.gmra.mrb[20].mxu1 %vm639_vm8, %v4614_v14  ;;  %3644 = vperm.xlu1 %4134, %v2103_v0   ;;  %v1441_v14 = vsel %vm1438_vm12, %v1431_v9, %v1433_v11 }
 0x28f   :  { %v2462_v16 = vpop.permute.xlu0 %2461  ;;  %1453 = vmatpush1.bf16.msra.mxu1 %v1439_v13  ;;  %1484 = vmatprep.mubr.bf16.mxu1 %v4189_v1 }
 0x290   :  { %v2464_v45 = vpop.permute.xlu1 %2463  ;;  %1495 = vmatprep.subr.bf16.mxu1 %v1442_v17 }
 0x291   :  { %v2472_v23 = vsel %vm925_vm9, %v2462_v16, %v2464_v45 }
 0x293   :  { %v2460_v46 = vpop.permute.xlu0 %2459  ;;  %3780 = vmatmul.mubr.msk.bf16.vlgmr.msra.gmra.mrb[44].mxu0 %vm639_vm8, %v4181_v52 }
 0x294   :  { %v1600_v22 = vpop.permute.xlu1 %1599  ;;  %3945 = vmatpush3.bf16.msra.mxu0 %v4533_v53  ;;  %3946 = vmatprep.mubr.msk.bf16.mxu0 %vm4191_vm0, %v4190_v2  ;;  %v2471_v53 = vsel %vm925_vm9, %v2460_v46, %v2462_v16 }
 0x295   :  { %2484 = vmatprep.subr.bf16.mxu0 %v2472_v23 }
 0x296   :  { %3751 = vmatmul.mubr.msk.bf16.vlgmr.msra.gmra.mrb[16].mxu1 %vm639_vm8, %v4639_v18 }
 0x297   :  { %v1602_v12 = vpop.permute.xlu0 %1601  ;;  %1496 = vmatpush1.bf16.msra.mxu1 %v1441_v14  ;;  %1527 = vmatprep.mubr.bf16.mxu1 %v4189_v1 }
 0x298   :  { %v1598_v24 = vpop.permute.xlu1 %1597  ;;  %v1611_v25 = vsel %vm1609_vm13, %v1600_v22, %v1602_v12 }
 0x299   :  { %1623 = vmatprep.subr.bf16.mxu1 %v1611_v25  ;;  %v1610_v54 = vsel %vm1609_vm13, %v1598_v24, %v1600_v22  ;;  %v4976_v24 = vld [vmem:[%s5128_s4 + $0x28] sm:$0xff]  }
 0x29b   :  { %v1604_v26 = vpop.permute.xlu0 %1603  ;;  %3947 = vmatmul.mubr.msk.bf16.vlgmr.msra.gmra.mrb[52].mxu0 %vm639_vm8, %v4181_v52 }
 0x29c   :  { %v2631_v20 = vpop.permute.xlu1 %2630  ;;  %2485 = vmatpush1.bf16.msra.mxu0 %v2471_v53  ;;  %2516 = vmatprep.mubr.bf16.mxu0 %v4189_v1  ;;  %v1613_v48 = vsel %vm1609_vm13, %v1604_v26, %v4618_v15  ;;  %v1612_v21 = vsel %vm1609_vm13, %v1602_v12, %v1604_v26 }
 0x29e   :  { %3752 = vmatmul.mubr.msk.bf16.vlgmr.msra.gmra.mrb[20].mxu1 %vm639_vm8, %v4639_v18 }
 0x29f   :  { %v2466_v27 = vpop.permute.xlu0 %2465  ;;  %1624 = vmatpush1.bf16.msra.mxu1 %v1610_v54  ;;  %1655 = vmatprep.mubr.bf16.mxu1 %v4189_v1 }
 0x2a0   :  { %v4891_v35 = vpop.permute.xlu1 %2467  ;;  %1666 = vmatprep.subr.bf16.mxu1 %v1613_v48  ;;  %v2473_v18 = vsel %vm925_vm9, %v2464_v45, %v2466_v27 }
 0x2a1   :  { %v2474_v29 = vsel %vm925_vm9, %v2466_v27, %v4891_v35 }
 0x2a2   :  { %2527 = vmatprep.subr.bf16.mxu0 %v2474_v29 }
 0x2a3   :  { %v2633_v31 = vpop.permute.xlu0 %2632  ;;  %3785 = vmatmul.mubr.msk.bf16.vlgmr.msra.gmra.mrb[40].mxu0 %vm639_vm8, %v4888_v33 }
 0x2a4   :  { %v2629_v15 = vpop.permute.xlu1 %2628  ;;  %2528 = vmatpush1.bf16.msra.mxu0 %v2473_v18  ;;  %v2641_v32 = vsel %vm1096_vm10, %v2631_v20, %v2633_v31  ;;  %2559 = vmatprep.mubr.bf16.mxu0 %v4189_v1 }
 0x2a5   :  { %2653 = vmatprep.subr.bf16.mxu0 %v2641_v32  ;;  %v2640_v39 = vsel %vm1096_vm10, %v2629_v15, %v2631_v20 }
 0x2a6   :  { %3757 = vmatmul.mubr.msk.bf16.vlgmr.msra.gmra.mrb[16].mxu1 %vm639_vm8, %v4666_v50 }
 0x2a7   :  { %v1771_v36 = vpop.permute.xlu0 %1770  ;;  %1667 = vmatpush1.bf16.msra.mxu1 %v1612_v21  ;;  %1698 = vmatprep.mubr.bf16.mxu1 %v4189_v1 }
 0x2a8   :  { %v1773_v37 = vpop.permute.xlu1 %1772 }
 0x2a9   :  { %v1782_v38 = vsel %vm1780_vm14, %v1771_v36, %v1773_v37 }
 0x2aa   :  { %1794 = vmatprep.subr.bf16.mxu1 %v1782_v38 }
 0x2ab   :  { %v1769_v40 = vpop.permute.xlu0 %1768  ;;  %3786 = vmatmul.mubr.msk.bf16.vlgmr.msra.gmra.mrb[44].mxu0 %vm639_vm8, %v4888_v33 }
 0x2ac   :  { %v1775_v41 = vpop.permute.xlu1 %1774  ;;  %2654 = vmatpush1.bf16.msra.mxu0 %v2640_v39  ;;  %2685 = vmatprep.mubr.bf16.mxu0 %v4189_v1  ;;  %v1781_v47 = vsel %vm1780_vm14, %v1769_v40, %v1771_v36 }
 0x2ad   :  { %v1784_v55 = vsel %vm1780_vm14, %v1775_v41, %v4643_v19  ;;  %v1783_v61 = vsel %vm1780_vm14, %v1773_v37, %v1775_v41 }
 0x2ae   :  { %3758 = vmatmul.mubr.msk.bf16.vlgmr.msra.gmra.mrb[20].mxu1 %vm639_vm8, %v4666_v50 }
 0x2af   :  { %v4912_v51 = vpop.permute.xlu0 %2636  ;;  %1795 = vmatpush1.bf16.msra.mxu1 %v1781_v47  ;;  %1826 = vmatprep.mubr.bf16.mxu1 %v4189_v1 }
 0x2b0   :  { %v2635_v57 = vpop.permute.xlu1 %2634  ;;  %1837 = vmatprep.subr.bf16.mxu1 %v1784_v55 }
 0x2b1   :  { %v2643_v58 = vsel %vm1096_vm10, %v2635_v57, %v4912_v51  ;;  %v2642_v50 = vsel %vm1096_vm10, %v2633_v31, %v2635_v57 }
 0x2b2   :  { %2696 = vmatprep.subr.bf16.mxu0 %v2643_v58 }
 0x2b3   :  { %v2800_v59 = vpop.permute.xlu0 %2799  ;;  %3791 = vmatmul.mubr.msk.bf16.vlgmr.msra.gmra.mrb[40].mxu0 %vm639_vm8, %v4919_v56 }
 0x2b4   :  { %v2802_v19 = vpop.permute.xlu1 %2801  ;;  %2697 = vmatpush1.bf16.msra.mxu0 %v2642_v50  ;;  %2728 = vmatprep.mubr.bf16.mxu0 %v4189_v1  ;;  %v5007_v50 = vld [vmem:[%s5128_s4 + $0x30] sm:$0xff]  }
 0x2b5   :  { %v2810_v60 = vsel %vm1267_vm11, %v2800_v59, %v2802_v19 }
 0x2b6   :  { %2822 = vmatprep.subr.bf16.mxu0 %v2810_v60  ;;  %3763 = vmatmul.mubr.msk.bf16.vlgmr.msra.gmra.mrb[16].mxu1 %vm639_vm8, %v4692_v30 }
 0x2b7   :  { %v2798_v62 = vpop.permute.xlu0 %2797  ;;  %1838 = vmatpush1.bf16.msra.mxu1 %v1783_v61  ;;  %1869 = vmatprep.mubr.bf16.mxu1 %v4189_v1 }
 0x2b8   :  { %v1942_v42 = vpop.permute.xlu1 %1941  ;;  %v2809_v4 = vsel %vm1267_vm11, %v2798_v62, %v2800_v59 }
 0x2bb   :  { %v1944_v3 = vpop.permute.xlu0 %1943  ;;  %3792 = vmatmul.mubr.msk.bf16.vlgmr.msra.gmra.mrb[44].mxu0 %vm639_vm8, %v4919_v56 }
 0x2bc   :  { %v1940_v5 = vpop.permute.xlu1 %1939  ;;  %v1953_v6 = vsel %vm1951_vm15, %v1942_v42, %v1944_v3  ;;  %2823 = vmatpush1.bf16.msra.mxu0 %v2809_v4  ;;  %2854 = vmatprep.mubr.bf16.mxu0 %v4189_v1 }
 0x2bd   :  { %1965 = vmatprep.subr.bf16.mxu1 %v1953_v6  ;;  %v1952_v8 = vsel %vm1951_vm15, %v1940_v5, %v1942_v42 }
 0x2be   :  { %3764 = vmatmul.mubr.msk.bf16.vlgmr.msra.gmra.mrb[20].mxu1 %vm639_vm8, %v4692_v30 }
 0x2bf   :  { %v2804_v43 = vpop.permute.xlu0 %2803  ;;  %1966 = vmatpush1.bf16.msra.mxu1 %v1952_v8  ;;  %1997 = vmatprep.mubr.bf16.mxu1 %v4189_v1 }
 0x2c0   :  { %v4947_v9 = vpop.permute.xlu1 %2805  ;;  %v2811_v63 = vsel %vm1267_vm11, %v2802_v19, %v2804_v43 }
 0x2c1   :  { %v2812_v10 = vsel %vm1267_vm11, %v2804_v43, %v4947_v9 }
 0x2c2   :  { %2865 = vmatprep.subr.bf16.mxu0 %v2812_v10 }
 0x2c3   :  { %v1946_v28 = vpop.permute.xlu0 %1945  ;;  %3797 = vmatmul.mubr.msk.bf16.vlgmr.msra.gmra.mrb[40].mxu0 %vm639_vm8, %v4944_v7 }
 0x2c4   :  { %v2969_v30 = vpop.permute.xlu1 %2968  ;;  %v1955_v52 = vsel %vm1951_vm15, %v1946_v28, %v4696_v49  ;;  %2866 = vmatpush1.bf16.msra.mxu0 %v2811_v63  ;;  %2897 = vmatprep.mubr.bf16.mxu0 %v4189_v1  ;;  %v1954_v0 = vsel %vm1951_vm15, %v1944_v3, %v1946_v28 }
 0x2c5   :  { %2008 = vmatprep.subr.bf16.mxu1 %v1955_v52 }
 0x2c6   :  { %3769 = vmatmul.mubr.msk.bf16.vlgmr.msra.gmra.mrb[16].mxu1 %vm639_vm8, %v4717_v34 }
 0x2c7   :  { %v2971_v44 = vpop.permute.xlu0 %2970  ;;  %2009 = vmatpush1.bf16.msra.mxu1 %v1954_v0  ;;  %2040 = vmatprep.mubr.bf16.mxu1 %v4189_v1 }
 0x2c8   :  { %v2967_v11 = vpop.permute.xlu1 %2966  ;;  %v2979_v13 = vsel %vm1438_vm12, %v2969_v30, %v2971_v44  ;;  %3950 = vmatprep.subr.bf16.mxu1 %v4190_v2 }
 0x2c9   :  { %2991 = vmatprep.subr.bf16.mxu0 %v2979_v13  ;;  %v2978_v16 = vsel %vm1438_vm12, %v2967_v11, %v2969_v30 }
 0x2ca   :  { %v763_v49 = vpop.f32.mrb[4].mxu0 }
 0x2cb   :  { %v2470_v17 = vpop.permute.xlu0 %2469  ;;  %3798 = vmatmul.mubr.msk.bf16.vlgmr.msra.gmra.mrb[44].mxu0 %vm639_vm8, %v4944_v7  ;;  %v3888_v45 = vpop.f32.mrb[5].mxu0 }
 0x2cc   :  { %v2973_v46 = vpop.permute.xlu1 %2972  ;;  %2992 = vmatpush1.bf16.msra.mxu0 %v2978_v16  ;;  %3023 = vmatprep.mubr.bf16.mxu0 %v4189_v1  ;;  %v766_v22 = vpop.f32.mrb[6].mxu0  ;;  %v2475_v14 = vsel %vm925_vm9, %v4891_v35, %v2470_v17  ;;  %v4187_v17 = vld [vmem:[%s5128_s4 + $0x38] sm:$0xff]  }
 0x2cd   :  { %v3889_v23 = vpop.f32.mrb[7].mxu0 }
 0x2ce   :  { %3770 = vmatmul.mubr.msk.bf16.vlgmr.msra.gmra.mrb[20].mxu1 %vm639_vm8, %v4717_v34  ;;  %v2980_v34 = vsel %vm1438_vm12, %v2971_v44, %v2973_v46 }
 0x2cf   :  { %v4971_v12 = vpop.permute.xlu0 %2974  ;;  %3951 = vmatpush3.bf16.msra.mxu1 %v2475_v14  ;;  %3952 = vmatprep.mubr.msk.bf16.mxu1 %vm4191_vm0, %v4190_v2 }
 0x2d0   :  { %v2639_v25 = vpop.permute.xlu1 %2638  ;;  %v2981_v53 = vsel %vm1438_vm12, %v2973_v46, %v4971_v12  ;;  %3956 = vmatprep.subr.bf16.mxu1 %v4190_v2 }
 0x2d1   :  { %3034 = vmatprep.subr.bf16.mxu0 %v2981_v53  ;;  %v2644_v15 = vsel %vm1096_vm10, %v4912_v51, %v2639_v25 }
 0x2d2   :  { %v898_v26 = vpop.f32.mrb[8].mxu0 }
 0x2d3   :  { %v3138_v20 = vpop.permute.xlu0 %3137  ;;  %3803 = vmatmul.mubr.msk.bf16.vlgmr.msra.gmra.mrb[40].mxu0 %vm639_vm8, %v4976_v24  ;;  %v899_v54 = vadd.f32 %v898_v26, %v763_v49  ;;  %v3894_v27 = vpop.f32.mrb[9].mxu0 }
 0x2d4   :  { %v3140_v48 = vpop.permute.xlu1 %3139  ;;  %3035 = vmatpush1.bf16.msra.mxu0 %v2980_v34  ;;  %3066 = vmatprep.mubr.bf16.mxu0 %v4189_v1  ;;  %v901_v35 = vpop.f32.mrb[10].mxu0 }
 0x2d5   :  { %v3148_v29 = vsel %vm1609_vm13, %v3138_v20, %v3140_v48  ;;  %v902_v18 = vadd.f32 %v901_v35, %v766_v22  ;;  %v3895_v31 = vpop.f32.mrb[11].mxu0 }
 0x2d6   :  { %3160 = vmatprep.subr.bf16.mxu0 %v3148_v29  ;;  %3953 = vmatmul.mubr.msk.bf16.vlgmr.msra.gmra.mrb[24].mxu1 %vm639_vm8, %v4888_v33 }
 0x2d7   :  { %v3136_v32 = vpop.permute.xlu0 %3135  ;;  %3957 = vmatpush3.bf16.msra.mxu1 %v2644_v15  ;;  %3958 = vmatprep.mubr.msk.bf16.mxu1 %vm4191_vm0, %v4190_v2 }
 0x2d8   :  { %v2808_v21 = vpop.permute.xlu1 %2807  ;;  %3962 = vmatprep.subr.bf16.mxu1 %v4190_v2  ;;  %v3147_v37 = vsel %vm1609_vm13, %v3136_v32, %v3138_v20 }
 0x2d9   :  { %v2813_v57 = vsel %vm1267_vm11, %v4947_v9, %v2808_v21 }
 0x2da   :  { %v1059_v36 = vpop.f32.mrb[12].mxu0 }
 0x2db   :  { %v3142_v38 = vpop.permute.xlu0 %3141  ;;  %3804 = vmatmul.mubr.msk.bf16.vlgmr.msra.gmra.mrb[44].mxu0 %vm639_vm8, %v4976_v24  ;;  %v1070_v39 = vadd.f32 %v1059_v36, %v899_v54  ;;  %v3900_v40 = vpop.f32.mrb[13].mxu0 }
 0x2dc   :  { %v3144_v41 = vpop.permute.xlu1 %3143  ;;  %3161 = vmatpush1.bf16.msra.mxu0 %v3147_v37  ;;  %3192 = vmatprep.mubr.bf16.mxu0 %v4189_v1  ;;  %v1062_v33 = vpop.f32.mrb[14].mxu0  ;;  %v3149_v60 = vsel %vm1609_vm13, %v3140_v48, %v3142_v38  ;;  %v4188_v37 = vld [vmem:[%s5128_s4 + $0x40] sm:$0xff]  }
 0x2dd   :  { %v3150_v47 = vsel %vm1609_vm13, %v3142_v38, %v3144_v41  ;;  %v1075_v51 = vadd.f32 %v1062_v33, %v902_v18  ;;  %v3901_v55 = vpop.f32.mrb[15].mxu0 }
 0x2de   :  { %3203 = vmatprep.subr.bf16.mxu0 %v3150_v47  ;;  %3959 = vmatmul.mubr.msk.bf16.vlgmr.msra.gmra.mrb[28].mxu1 %vm639_vm8, %v4919_v56 }
 0x2df   :  { %v2977_v58 = vpop.permute.xlu0 %2976  ;;  %3963 = vmatpush3.bf16.msra.mxu1 %v2813_v57  ;;  %3964 = vmatprep.mubr.msk.bf16.mxu1 %vm4191_vm0, %v4190_v2 }
 0x2e0   :  { %v3307_v59 = vpop.permute.xlu1 %3306  ;;  %3968 = vmatprep.subr.bf16.mxu1 %v4190_v2  ;;  %v2982_v8 = vsel %vm1438_vm12, %v4971_v12, %v2977_v58 }
 0x2e2   :  { %v1230_v19 = vpop.f32.mrb[16].mxu0 }
 0x2e3   :  { %v3309_v61 = vpop.permute.xlu0 %3308  ;;  %3809 = vmatmul.mubr.msk.bf16.vlgmr.msra.gmra.mrb[40].mxu0 %vm639_vm8, %v5007_v50  ;;  %v1241_v56 = vadd.f32 %v1230_v19, %v1070_v39  ;;  %v3906_v62 = vpop.f32.mrb[17].mxu0 }
 0x2e4   :  { %v3305_v42 = vpop.permute.xlu1 %3304  ;;  %3204 = vmatpush1.bf16.msra.mxu0 %v3149_v60  ;;  %v3317_v4 = vsel %vm1780_vm14, %v3307_v59, %v3309_v61  ;;  %3235 = vmatprep.mubr.bf16.mxu0 %v4189_v1  ;;  %v1233_v3 = vpop.f32.mrb[18].mxu0 }
 0x2e5   :  { %3329 = vmatprep.subr.bf16.mxu0 %v3317_v4  ;;  %v1246_v5 = vadd.f32 %v1233_v3, %v1075_v51  ;;  %v3907_v6 = vpop.f32.mrb[19].mxu0  ;;  %v3316_v63 = vsel %vm1780_vm14, %v3305_v42, %v3307_v59 }
 0x2e6   :  { %3965 = vmatmul.mubr.msk.bf16.vlgmr.msra.gmra.mrb[32].mxu1 %vm639_vm8, %v4944_v7 }
 0x2e7   :  { %v3146_v43 = vpop.permute.xlu0 %3145  ;;  %3969 = vmatpush3.bf16.msra.mxu1 %v2982_v8  ;;  %3970 = vmatprep.mubr.msk.bf16.mxu1 %vm4191_vm0, %v4190_v2 }
 0x2e8   :  { %v3311_v9 = vpop.permute.xlu1 %3310  ;;  %3974 = vmatprep.subr.bf16.mxu1 %v4190_v2  ;;  %v3151_v49 = vsel %vm1609_vm13, %v3144_v41, %v3146_v43 }
 0x2e9   :  { %v3318_v22 = vsel %vm1780_vm14, %v3309_v61, %v3311_v9 }
 0x2ea   :  { %v1401_v10 = vpop.f32.mrb[20].mxu0 }
 0x2eb   :  { %v3313_v28 = vpop.permute.xlu0 %3312  ;;  %3810 = vmatmul.mubr.msk.bf16.vlgmr.msra.gmra.mrb[44].mxu0 %vm639_vm8, %v5007_v50  ;;  %v1412_v30 = vadd.f32 %v1401_v10, %v1241_v56  ;;  %v3912_v52 = vpop.f32.mrb[21].mxu0 }
 0x2ec   :  { %v3315_v0 = vpop.permute.xlu1 %3314  ;;  %3330 = vmatpush1.bf16.msra.mxu0 %v3316_v63  ;;  %v3319_v7 = vsel %vm1780_vm14, %v3311_v9, %v3313_v28  ;;  %3361 = vmatprep.mubr.bf16.mxu0 %v4189_v1  ;;  %v1404_v44 = vpop.f32.mrb[22].mxu0 }
 0x2ed   :  { %3372 = vmatprep.subr.bf16.mxu0 %v3319_v7  ;;  %v1417_v11 = vadd.f32 %v1404_v44, %v1246_v5  ;;  %v3913_v13 = vpop.f32.mrb[23].mxu0  ;;  %v3320_v20 = vsel %vm1780_vm14, %v3313_v28, %v3315_v0 }
 0x2ee   :  { %3971 = vmatmul.mubr.msk.bf16.vlgmr.msra.gmra.mrb[36].mxu1 %vm639_vm8, %v4976_v24 }
 0x2ef   :  { %v3476_v16 = vpop.permute.xlu0 %3475  ;;  %3975 = vmatpush3.bf16.msra.mxu1 %v3151_v49  ;;  %3976 = vmatprep.mubr.msk.bf16.mxu1 %vm4191_vm0, %v4190_v2 }
 0x2f0   :  { %v3478_v45 = vpop.permute.xlu1 %3477  ;;  %3980 = vmatprep.subr.bf16.mxu1 %v4190_v2 }
 0x2f1   :  { %v3486_v24 = vsel %vm1951_vm15, %v3476_v16, %v3478_v45 }
 0x2f2   :  { %v1572_v46 = vpop.f32.mrb[24].mxu0 }
 0x2f3   :  { %v3474_v23 = vpop.permute.xlu0 %3473  ;;  %3815 = vmatmul.mubr.msk.bf16.vlgmr.msra.gmra.mrb[40].mxu0 %vm639_vm8, %v4187_v17  ;;  %v1583_v14 = vadd.f32 %v1572_v46, %v1412_v30  ;;  %v3918_v12 = vpop.f32.mrb[25].mxu0 }
 0x2f4   :  { %3373 = vmatpush1.bf16.msra.mxu0 %v3318_v22  ;;  %3404 = vmatprep.mubr.bf16.mxu0 %v4189_v1  ;;  %v1575_v25 = vpop.f32.mrb[26].mxu0  ;;  %v3480_v53 = vpop.permute.xlu1 %3479  ;;  %v3485_v48 = vsel %vm1951_vm15, %v3474_v23, %v3476_v16 }
 0x2f5   :  { %3498 = vmatprep.subr.bf16.mxu0 %v3486_v24  ;;  %v1588_v26 = vadd.f32 %v1575_v25, %v1417_v11  ;;  %v3919_v34 = vpop.f32.mrb[27].mxu0  ;;  %v3487_v39 = vsel %vm1951_vm15, %v3478_v45, %v3480_v53 }
 0x2f6   :  { %3977 = vmatmul.mubr.msk.bf16.vlgmr.msra.gmra.mrb[40].mxu1 %vm639_vm8, %v5007_v50 }
 0x2f7   :  { %3981 = vmatpush3.bf16.msra.mxu1 %v3320_v20  ;;  %3982 = vmatprep.mubr.msk.bf16.mxu1 %vm4191_vm0, %v4190_v2  ;;  %v3482_v54 = vpop.permute.xlu0 %3481 }
 0x2f8   :  { %3986 = vmatprep.subr.bf16.mxu1 %v4190_v2  ;;  %v3484_v35 = vpop.permute.xlu1 %3483  ;;  %v3488_v31 = vsel %vm1951_vm15, %v3480_v53, %v3482_v54 }
 0x2f9   :  { %v3489_v36 = vsel %vm1951_vm15, %v3482_v54, %v3484_v35 }
 0x2fa   :  { %v1743_v27 = vpop.f32.mrb[28].mxu0 }
 0x2fb   :  { %3816 = vmatmul.mubr.msk.bf16.vlgmr.msra.gmra.mrb[44].mxu0 %vm639_vm8, %v4187_v17  ;;  %v1754_v29 = vadd.f32 %v1743_v27, %v1583_v14  ;;  %v3924_v18 = vpop.f32.mrb[29].mxu0 }
 0x2fc   :  { %3499 = vmatpush1.bf16.msra.mxu0 %v3485_v48  ;;  %v1746_v15 = vpop.f32.mrb[30].mxu0  ;;  %3530 = vmatprep.mubr.bf16.mxu0 %v4189_v1 }
 0x2fd   :  { %3541 = vmatprep.subr.bf16.mxu0 %v3488_v31  ;;  %v1759_v32 = vadd.f32 %v1746_v15, %v1588_v26  ;;  %v3925_v21 = vpop.f32.mrb[31].mxu0 }
 0x2fe   :  { %3983 = vmatmul.mubr.msk.bf16.vlgmr.msra.gmra.mrb[44].mxu1 %vm639_vm8, %v4187_v17 }
 0x2ff   :  { %3987 = vmatpush3.bf16.msra.mxu1 %v3489_v36  ;;  %3988 = vmatprep.mubr.msk.bf16.mxu1 %vm4191_vm0, %v4190_v2 }
 0x302   :  { %v1914_v38 = vpop.f32.mrb[32].mxu0 }
 0x303   :  { %v1925_v40 = vadd.f32 %v1914_v38, %v1754_v29  ;;  %v3930_v41 = vpop.f32.mrb[33].mxu0  ;;  %3821 = vmatmul.mubr.msk.bf16.vlgmr.msra.gmra.mrb[40].mxu0 %vm639_vm8, %v4188_v37 }
 0x304   :  { %v1917_v33 = vpop.f32.mrb[34].mxu0  ;;  %3542 = vmatpush1.bf16.msra.mxu0 %v3487_v39  ;;  %3573 = vmatprep.mubr.bf16.mxu0 %v4189_v1 }
 0x305   :  { %v1930_v47 = vadd.f32 %v1917_v33, %v1759_v32  ;;  %v3931_v51 = vpop.f32.mrb[35].mxu0 }
 0x306   :  { %3989 = vmatmul.mubr.msk.bf16.vlgmr.msra.gmra.mrb[48].mxu1 %vm639_vm8, %v4188_v37 }
 0x308   :  { %v2107_v58 = vpop.permute.xlu0 %2106 }
 0x309   :  { %v2112_v59 = vpop.permute.xlu1 %2111 }
 0x30a   :  { %v2085_v55 = vpop.f32.mrb[36].mxu0 }
 0x30b   :  { %v2096_v57 = vadd.f32 %v2085_v55, %v1925_v40  ;;  %3822 = vmatmul.mubr.msk.bf16.vlgmr.msra.gmra.mrb[44].mxu0 %vm639_vm8, %v4188_v37  ;;  %v3936_v2 = vpop.f32.mrb[37].mxu0 }
 0x30c   :  { %v2088_v50 = vpop.f32.mrb[38].mxu0 }
 0x30d   :  { %v2118_v19 = vadd.f32 %v2107_v58, %v2096_v57  ;;  %v2101_v60 = vadd.f32 %v2088_v50, %v1930_v47  ;;  %v3937_v61 = vpop.f32.mrb[39].mxu0 }
 0x30f   :  { %v2128_v56 = vmax.f32 %v2118_v19, 0.0  ;;  %v2123_v62 = vadd.f32 %v2112_v59, %v2101_v60 }
 0x311   :  { %2138 = vst [vmem:[%s5130_s6 + $0x20] sm:$0xff] %v2128_v56  ;;  %v2133_v1 = vmax.f32 %v2123_v62, 0.0 }
 0x313   :  { %2143 = vst [vmem:[%s5130_s6 + $0x48] sm:$0xff] %v2133_v1 }
 0x356   :  { %v2310_v42 = vpop.f32.mrb[48].mxu0 }
 0x357   :  { %v3942_v4 = vpop.f32.mrb[49].mxu0 }
 0x358   :  { %v2313_v3 = vpop.f32.mrb[50].mxu0 }
 0x359   :  { %v3943_v5 = vpop.f32.mrb[51].mxu0 }
 0x36e   :  { %v2445_v6 = vpop.f32.mrb[52].mxu0 }
 0x36f   :  { %v2446_v8 = vadd.f32 %v2445_v6, %v2310_v42  ;;  %v3948_v43 = vpop.f32.mrb[53].mxu0 }
 0x370   :  { %v2448_v9 = vpop.f32.mrb[54].mxu0  ;;  %v3640_v43 = vpop.permute.xlu0 %3639 }
 0x371   :  { %v2449_v10 = vadd.f32 %v2448_v9, %v2313_v3  ;;  %v3949_v63 = vpop.f32.mrb[55].mxu0 }
 0x399   :  { %v1999_v28 = vpop.f32.mrb[16].mxu1 }
 0x39a   :  { %v2114_v30 = vadd.f32 %v2107_v58, %v1999_v28  ;;  %v2001_v52 = vpop.f32.mrb[17].mxu1 }
 0x39b   :  { %v2115_v0 = vadd.f32 %v2107_v58, %v2001_v52  ;;  %v2003_v7 = vpop.f32.mrb[18].mxu1 }
 0x39c   :  { %v2124_v44 = vmax.f32 %v2114_v30, 0.0  ;;  %v2119_v11 = vadd.f32 %v2112_v59, %v2003_v7  ;;  %v2005_v13 = vpop.f32.mrb[19].mxu1 }
 0x39d   :  { %v2125_v49 = vmax.f32 %v2115_v0, 0.0  ;;  %v2120_v16 = vadd.f32 %v2112_v59, %v2005_v13 }
 0x39e   :  { %2134 = vst [vmem:[%s5130_s6] sm:$0xff] %v2124_v44  ;;  %v2129_v17 = vmax.f32 %v2119_v11, 0.0 }
 0x39f   :  { %2135 = vst [vmem:[%s5130_s6 + $0x8] sm:$0xff] %v2125_v49  ;;  %v2130_v45 = vmax.f32 %v2120_v16, 0.0 }
 0x3a0   :  { %2139 = vst [vmem:[%s5130_s6 + $0x28] sm:$0xff] %v2129_v17 }
 0x3a1   :  { %2140 = vst [vmem:[%s5130_s6 + $0x30] sm:$0xff] %v2130_v45  ;;  %v2042_v46 = vpop.f32.mrb[20].mxu1 }
 0x3a2   :  { %v2116_v22 = vadd.f32 %v2107_v58, %v2042_v46  ;;  %v2044_v23 = vpop.f32.mrb[21].mxu1 }
 0x3a3   :  { %v2117_v14 = vadd.f32 %v2107_v58, %v2044_v23  ;;  %v2046_v12 = vpop.f32.mrb[22].mxu1 }
 0x3a4   :  { %v2126_v24 = vmax.f32 %v2116_v22, 0.0  ;;  %v2121_v25 = vadd.f32 %v2112_v59, %v2046_v12  ;;  %v2048_v53 = vpop.f32.mrb[23].mxu1 }
 0x3a5   :  { %v2127_v26 = vmax.f32 %v2117_v14, 0.0  ;;  %v2122_v34 = vadd.f32 %v2112_v59, %v2048_v53 }
 0x3a6   :  { %2136 = vst [vmem:[%s5130_s6 + $0x10] sm:$0xff] %v2126_v24  ;;  %v2131_v20 = vmax.f32 %v2121_v25, 0.0 }
 0x3a7   :  { %2137 = vst [vmem:[%s5130_s6 + $0x18] sm:$0xff] %v2127_v26  ;;  %v2132_v54 = vmax.f32 %v2122_v34, 0.0 }
 0x3a8   :  { %2141 = vst [vmem:[%s5130_s6 + $0x38] sm:$0xff] %v2131_v20 }
 0x3a9   :  { %2142 = vst [vmem:[%s5130_s6 + $0x40] sm:$0xff] %v2132_v54  ;;  %v2604_v27 = vpop.f32.mrb[24].mxu1 }
 0x3aa   :  { %v2615_v48 = vadd.f32 %v2604_v27, %v2446_v8  ;;  %v3954_v35 = vpop.f32.mrb[25].mxu1 }
 0x3ab   :  { %v2607_v29 = vpop.f32.mrb[26].mxu1 }
 0x3ac   :  { %v2620_v18 = vadd.f32 %v2607_v29, %v2449_v10  ;;  %v3955_v31 = vpop.f32.mrb[27].mxu1  ;;  %v3645_v10 = vpop.permute.xlu1 %3644 }
 0x3b1   :  { %v2773_v15 = vpop.f32.mrb[28].mxu1 }
 0x3b2   :  { %v2784_v32 = vadd.f32 %v2773_v15, %v2615_v48  ;;  %v3960_v21 = vpop.f32.mrb[29].mxu1 }
 0x3b3   :  { %v2776_v36 = vpop.f32.mrb[30].mxu1 }
 0x3b4   :  { %v2789_v37 = vadd.f32 %v2776_v36, %v2620_v18  ;;  %v3961_v38 = vpop.f32.mrb[31].mxu1 }
 0x3b9   :  { %v2942_v39 = vpop.f32.mrb[32].mxu1 }
 0x3ba   :  { %v2953_v40 = vadd.f32 %v2942_v39, %v2784_v32  ;;  %v3966_v41 = vpop.f32.mrb[33].mxu1 }
 0x3bb   :  { %v2945_v33 = vpop.f32.mrb[34].mxu1 }
 0x3bc   :  { %v2958_v47 = vadd.f32 %v2945_v33, %v2789_v37  ;;  %v3967_v51 = vpop.f32.mrb[35].mxu1 }
 0x3c1   :  { %v3111_v55 = vpop.f32.mrb[36].mxu1 }
 0x3c2   :  { %v3122_v57 = vadd.f32 %v3111_v55, %v2953_v40  ;;  %v3972_v58 = vpop.f32.mrb[37].mxu1 }
 0x3c3   :  { %v3114_v2 = vpop.f32.mrb[38].mxu1 }
 0x3c4   :  { %v3127_v50 = vadd.f32 %v3114_v2, %v2958_v47  ;;  %v3973_v59 = vpop.f32.mrb[39].mxu1 }
 0x3c9   :  { %v3280_v19 = vpop.f32.mrb[40].mxu1 }
 0x3ca   :  { %v3291_v60 = vadd.f32 %v3280_v19, %v3122_v57  ;;  %v3978_v61 = vpop.f32.mrb[41].mxu1 }
 0x3cb   :  { %v3283_v56 = vpop.f32.mrb[42].mxu1 }
 0x3cc   :  { %v3296_v62 = vadd.f32 %v3283_v56, %v3127_v50  ;;  %v3979_v1 = vpop.f32.mrb[43].mxu1 }
 0x3d1   :  { %v3449_v42 = vpop.f32.mrb[44].mxu1 }
 0x3d2   :  { %v3460_v4 = vadd.f32 %v3449_v42, %v3291_v60  ;;  %v3984_v3 = vpop.f32.mrb[45].mxu1 }
 0x3d3   :  { %v3452_v5 = vpop.f32.mrb[46].mxu1 }
 0x3d4   :  { %v3465_v6 = vadd.f32 %v3452_v5, %v3296_v62  ;;  %v3985_v8 = vpop.f32.mrb[47].mxu1 }
 0x3d6   :  { %v3532_v9 = vpop.f32.mrb[40].mxu0 }
 0x3d7   :  { %v3647_v63 = vadd.f32 %v3640_v43, %v3532_v9  ;;  %v3534_v28 = vpop.f32.mrb[41].mxu0 }
 0x3d8   :  { %v3648_v30 = vadd.f32 %v3640_v43, %v3534_v28  ;;  %v3536_v52 = vpop.f32.mrb[42].mxu0 }
 0x3d9   :  { %v3657_v0 = vmax.f32 %v3647_v63, 0.0  ;;  %v3652_v7 = vadd.f32 %v3645_v10, %v3536_v52  ;;  %v3538_v44 = vpop.f32.mrb[43].mxu0  ;;  %v3618_v11 = vpop.f32.mrb[48].mxu1 }
 0x3da   :  { %v3658_v13 = vmax.f32 %v3648_v30, 0.0  ;;  %v3653_v49 = vadd.f32 %v3645_v10, %v3538_v44  ;;  %v3629_v16 = vadd.f32 %v3618_v11, %v3460_v4  ;;  %v3990_v17 = vpop.f32.mrb[49].mxu1 }
 0x3db   :  { %3824 = vst [vmem:[%s5130_s6 + $0x50] sm:$0xff] %v3657_v0  ;;  %v3662_v45 = vmax.f32 %v3652_v7, 0.0  ;;  %v3621_v46 = vpop.f32.mrb[50].mxu1 }
 0x3dc   :  { %3825 = vst [vmem:[%s5130_s6 + $0x58] sm:$0xff] %v3658_v13  ;;  %v3663_v22 = vmax.f32 %v3653_v49, 0.0  ;;  %v3651_v23 = vadd.f32 %v3640_v43, %v3629_v16  ;;  %v3634_v14 = vadd.f32 %v3621_v46, %v3465_v6  ;;  %v3991_v12 = vpop.f32.mrb[51].mxu1 }
 0x3dd   :  { %3829 = vst [vmem:[%s5130_s6 + $0x78] sm:$0xff] %v3662_v45 }
 0x3de   :  { %3830 = vst [vmem:[%s5130_s6 + $0x80] sm:$0xff] %v3663_v22  ;;  %v3661_v24 = vmax.f32 %v3651_v23, 0.0  ;;  %v3656_v25 = vadd.f32 %v3645_v10, %v3634_v14  ;;  %v3575_v53 = vpop.f32.mrb[44].mxu0 }
 0x3df   :  { %v3649_v26 = vadd.f32 %v3640_v43, %v3575_v53  ;;  %v3577_v34 = vpop.f32.mrb[45].mxu0 }
 0x3e0   :  { %3828 = vst [vmem:[%s5130_s6 + $0x70] sm:$0xff] %v3661_v24  ;;  %v3666_v20 = vmax.f32 %v3656_v25, 0.0  ;;  %v3650_v54 = vadd.f32 %v3640_v43, %v3577_v34  ;;  %v3579_v27 = vpop.f32.mrb[46].mxu0 }
 0x3e1   :  { %v3659_v48 = vmax.f32 %v3649_v26, 0.0  ;;  %v3654_v35 = vadd.f32 %v3645_v10, %v3579_v27  ;;  %v3581_v29 = vpop.f32.mrb[47].mxu0 }
 0x3e2   :  { %3833 = vst [vmem:[%s5130_s6 + $0x98] sm:$0xff] %v3666_v20  ;;  %v3660_v18 = vmax.f32 %v3650_v54, 0.0  ;;  %v3655_v31 = vadd.f32 %v3645_v10, %v3581_v29 }
 0x3e3   :  { %3826 = vst [vmem:[%s5130_s6 + $0x60] sm:$0xff] %v3659_v48  ;;  %v3664_v15 = vmax.f32 %v3654_v35, 0.0 }
 0x3e4   :  { %3827 = vst [vmem:[%s5130_s6 + $0x68] sm:$0xff] %v3660_v18  ;;  %v3665_v32 = vmax.f32 %v3655_v31, 0.0 }
 0x3e5   :  { %3831 = vst [vmem:[%s5130_s6 + $0x88] sm:$0xff] %v3664_v15 }
 0x3e6   :  { %3832 = vst [vmem:[%s5130_s6 + $0x90] sm:$0xff] %v3665_v32 }

</bundles_post_ra>
